<compile_context>
chip_gen: v7x
topology: tpu7x:2x2x1
jax: 0.10.0
libtpu: 0.0.40
codegen_flags: <defaults>
</compile_context>

<pallas_src>
import jax
import jax.numpy as jnp
import numpy as np
from jax.experimental import pallas as pl
from jax.experimental.pallas import tpu as pltpu

BN_EPS = 1e-5
OUT_PAD = 128  # lane-dense output width; real output is the first 3 lanes
CIN_PAD = 8    # layer-1 input channels zero-padded 3 -> 8


def _round_up(a, m):
    return (a + m - 1) // m * m


def _chip_generation():
    """Best-effort TPU generation detection; all paths are numerically valid,
    this only selects the per-chip performance variant."""
    try:
        kind = jax.devices()[0].device_kind.lower().replace(" ", "")
    except Exception:
        return "unknown"
    if "v5lite" in kind or "v5e" in kind:
        return "v5e"
    if "v6" in kind:
        return "v6e"
    if "v7" in kind or "7x" in kind:
        return "v7x"
    if "v5" in kind:
        return "v5p"
    return "unknown"


# ----------------------------------------------------------------------------
# Kernel: one (Bt batches, Nt points) tile per grid step.
# ----------------------------------------------------------------------------
def _make_kernel(l1_mxu, bf16_epi):
    epi_dt = jnp.bfloat16 if bf16_epi else jnp.float32

    def kernel(x_ref,
               w1, b1, w2, b2, w3,           # Point_center (BN folded; b3 hoisted)
               b3, w4, b4, w5, b5, w6, b6,   # hoisted b3 + head (f32, BN folded)
               o_ref, acc_ref):
        k = pl.program_id(1)

        x = x_ref[...]                                     # (Bt, Nt, 8) f32
        bt, nt = x.shape[0], x.shape[1]

        # ---- layer 1 (3 -> 128)
        if l1_mxu:
            # v6e/v7x: MXU has slack while the VPU is the binding slot, so run
            # the zero-padded K=8 contraction on the MXU.
            xm = x.reshape(bt * nt, CIN_PAD).astype(jnp.bfloat16)
            h = jnp.dot(xm, w1[...], preferred_element_type=jnp.float32)
            h = jnp.maximum(h + b1[...], 0.0).astype(epi_dt)   # (Bt*Nt, 128)
        else:
            # v5e: VPU broadcast FMAs are free filler under the MXU-bound loop.
            w1v = w1[...]                                       # (8, 128) f32
            h = (x[:, :, 0:1] * w1v[0:1, :]
                 + x[:, :, 1:2] * w1v[1:2, :]
                 + x[:, :, 2:3] * w1v[2:3, :]
                 + b1[...])
            h = jnp.maximum(h, 0.0).astype(epi_dt).reshape(bt * nt, 128)

        # ---- layers 2-3: bf16 MXU matmuls, batch-fused M.
        # On v6e/v7x the outputs stay bf16 (f32 accumulation inside the MXU),
        # halving the bias/ReLU/max epilogue on the saturating VPU slot.
        h2 = jnp.dot(h.astype(jnp.bfloat16), w2[...],
                     preferred_element_type=epi_dt) + b2[...]
        h2 = jnp.maximum(h2, 0.0)                          # (Bt*Nt, 256)
        h3 = jnp.dot(h2.astype(jnp.bfloat16), w3[...],
                     preferred_element_type=epi_dt)        # (Bt*Nt, 512), no b3
        h3 = h3.reshape(bt, nt, 512)

        # N-padding rows are replicated real points, so no masking is needed.
        tile_max = jnp.max(h3, axis=1).astype(jnp.float32)  # (Bt, 512)

        # ---- running max over the N-tile (reduction) grid axis.
        @pl.when(k == 0)
        def _():
            acc_ref[...] = jnp.full(acc_ref.shape, -jnp.inf, acc_ref.dtype)

        acc_ref[...] = jnp.maximum(acc_ref[...], tile_max)

        # ---- head on the last N tile, batched over Bt pooled features (f32:
        # M is tiny so full precision is essentially free and tightens error).
        @pl.when(k == pl.num_programs(1) - 1)
        def _():
            g = acc_ref[...] + b3[...]                     # hoisted bn3 bias
            g = jnp.maximum(jnp.dot(g, w4[...],
                                    preferred_element_type=jnp.float32)
                            + b4[...], 0.0)                # (Bt, 256)
            g = jnp.dot(g, w5[...],
                        preferred_element_type=jnp.float32) + b5[...]
            # drop1: eval-mode Dropout(0.2) == identity
            o_ref[...] = jnp.dot(g, w6[...],
                                 preferred_element_type=jnp.float32) + b6[...]

    return kernel


# ----------------------------------------------------------------------------
# Wrapper
# ----------------------------------------------------------------------------
def _prepare_kernel_params(folded, l1_mxu, bf16_epi):
    """Pad/cast weights for the kernel: w1 K-padded 3->8, conv3 out-padded
    3->128, bf16 for the point-wise MXU layers, f32 for the head."""
    (w1, b1), (w2, b2), (w3, b3), (w4, b4), (w5, b5), (w6, b6) = folded
    f32, bf16 = jnp.float32, jnp.bfloat16
    epi = bf16 if bf16_epi else f32

    w1p = jnp.zeros((CIN_PAD, w1.shape[1]), f32).at[:3, :].set(w1)
    w1p = w1p.astype(bf16 if l1_mxu else f32)

    w6p = jnp.zeros((w6.shape[0], OUT_PAD), f32).at[:, :w6.shape[1]].set(w6)
    b6p = jnp.zeros((1, OUT_PAD), f32).at[:, :b6.shape[1]].set(b6)

    return [
        w1p, b1.astype(f32),
        w2.astype(bf16), b2.astype(epi),
        w3.astype(bf16),
        b3.astype(f32),                 # hoisted into the head (f32)
        w4.astype(f32), b4.astype(f32),
        w5.astype(f32), b5.astype(f32),
        w6p.astype(f32), b6p.astype(f32),
    ]


def pose_t_v2_pallas(x, folded_params, *, n_tile_max=4096, target_rows=None):
    """x: (B, N, 3) float32; folded_params: list of 6 (W_in_out, b_1_out)."""
    B, N, C = x.shape
    assert C == 3

    gen = _chip_generation()
    l1_mxu = gen in ("v6e", "v7x")       # VPU is the binding slot there
    bf16_epi = gen in ("v6e", "v7x")     # native bf16 VALU
    allow_bt_split = gen == "v7x"        # only v7x has 2 TensorCores
    if target_rows is None:
        target_rows = 4096 if gen == "v7x" else (8192 if gen in ("v5e", "v6e") else 4096)

    # Tiling: tile N (16-aligned so bf16 reshapes stay layout no-ops) and fuse
    # batches so each grid step presents >= target_rows rows to the MXU.
    Nt = min(_round_up(N, 16), n_tile_max)
    N_pad = _round_up(N, Nt)
    Bt = max(1, min(B, pl.cdiv(target_rows, Nt)))
    if allow_bt_split and B >= 4 and (B // Bt) < 2:
        Bt = pl.cdiv(B, 2)               # keep >=2 parallel batch steps (2 TCs)
    B_pad = _round_up(B, Bt)
    # TODO(synk): for B<=2 with very large N on v7x, split the N axis across
    # the two TensorCores (emit per-half pooled maxima, run the head outside).

    # Batch-pad with zeros (rows sliced off), then N-pad by REPLICATING a real
    # point (duplicates cannot change the max -> no in-kernel masking), then
    # zero-pad channels 3 -> 8 (w1 rows 3..7 are zero).
    if B_pad != B:
        x = jnp.pad(x, ((0, B_pad - B), (0, 0), (0, 0)))
    if N_pad != N:
        rep = jnp.broadcast_to(x[:, :1, :], (B_pad, N_pad - N, C))
        x = jnp.concatenate([x, rep], axis=1)
    x = jnp.pad(x, ((0, 0), (0, 0), (0, CIN_PAD - C)))

    flat = _prepare_kernel_params(folded_params, l1_mxu, bf16_epi)

    def const_spec(a):
        nd = a.ndim
        return pl.BlockSpec(a.shape, lambda b, k, _nd=nd: (0,) * _nd)

    in_specs = [pl.BlockSpec((Bt, Nt, CIN_PAD), lambda b, k: (b, k, 0))] + \
               [const_spec(a) for a in flat]
    out_spec = pl.BlockSpec((Bt, OUT_PAD), lambda b, k: (b, 0))

    # Explicit VMEM budget: the x block lane-pads 8->128 (double-buffered) and
    # layers 1-3 keep ~4-6 KiB of intermediates per row; cap lower on v7x
    # (64 MiB physical) than on v5e/v6e (128 MiB).
    rows = Bt * Nt
    need = rows * 8 * 1024 + (8 << 20)
    cap = (48 << 20) if gen == "v7x" else ((96 << 20) if gen in ("v5e", "v6e") else (64 << 20))
    vmem_limit = int(min(cap, max(32 << 20, need)))

    flops = (2 * B_pad * N_pad * (3 * 128 + 128 * 256 + 256 * 512)
             + 2 * B_pad * (512 * 256 + 256 * 128 + 128 * 3))
    bytes_accessed = (int(x.size) * 4 + B_pad * OUT_PAD * 4
                      + sum(int(np.prod(a.shape)) * int(a.dtype.itemsize)
                            for a in flat))

    kernel = _make_kernel(l1_mxu, bf16_epi)

    out = pl.pallas_call(
        kernel,
        out_shape=jax.ShapeDtypeStruct((B_pad, OUT_PAD), jnp.float32),
        grid_spec=pltpu.PrefetchScalarGridSpec(
            num_scalar_prefetch=0,
            grid=(B_pad // Bt, N_pad // Nt),
            in_specs=in_specs,
            out_specs=out_spec,
            scratch_shapes=[pltpu.VMEM((Bt, 512), jnp.float32)],
        ),
        compiler_params=pltpu.CompilerParams(
            dimension_semantics=("parallel", "arbitrary"),
            vmem_limit_bytes=vmem_limit),
        cost_estimate=pl.CostEstimate(flops=int(flops), transcendentals=0,
                                      bytes_accessed=int(bytes_accessed)),
    )(x, *flat)

    return out[:B, :3]


# ----------------------------------------------------------------------------
# Deterministic parameter init + BN folding (eval-mode semantics).
# ----------------------------------------------------------------------------
def init_params(key):
    def conv1d(key, cin, cout):
        kw, kb = jax.random.split(key)
        w = jax.random.normal(kw, (cout, cin), jnp.float32) * 0.05
        b = jax.random.normal(kb, (cout,), jnp.float32) * 0.05
        return w, b

    def bn(key, c):
        kg, kb, km, kv = jax.random.split(key, 4)
        gamma = 1.0 + 0.1 * jax.random.normal(kg, (c,), jnp.float32)
        beta = 0.1 * jax.random.normal(kb, (c,), jnp.float32)
        mean = 0.1 * jax.random.normal(km, (c,), jnp.float32)
        var = jnp.abs(jax.random.normal(kv, (c,), jnp.float32)) + 0.5
        return gamma, beta, mean, var

    keys = jax.random.split(key, 11)
    return {
        "feat.conv1": conv1d(keys[0], 3, 128),   "feat.bn1": bn(keys[1], 128),
        "feat.conv2": conv1d(keys[2], 128, 256), "feat.bn2": bn(keys[3], 256),
        "feat.conv3": conv1d(keys[4], 256, 512), "feat.bn3": bn(keys[5], 512),
        "conv1": conv1d(keys[6], 512, 256),      "bn1": bn(keys[7], 256),
        "conv2": conv1d(keys[8], 256, 128),      "bn2": bn(keys[9], 128),
        "conv3": conv1d(keys[10], 128, 3),
    }


def fold_bn(conv, bn):
    """Fold eval-mode BatchNorm1d into a kernel-size-1 Conv1d."""
    w, b = conv                       # w: (out, in), b: (out,)
    gamma, beta, mean, var = bn
    scale = gamma / jnp.sqrt(var + BN_EPS)
    w_eff = w * scale[:, None]
    b_eff = (b - mean) * scale + beta
    # (in, out) / (1, out) for channels-last matmul in the kernel
    return w_eff.T, b_eff[None, :]


def fold_all(params):
    w6, b6 = params["conv3"]
    return [
        fold_bn(params["feat.conv1"], params["feat.bn1"]),
        fold_bn(params["feat.conv2"], params["feat.bn2"]),
        fold_bn(params["feat.conv3"], params["feat.bn3"]),
        fold_bn(params["conv1"], params["bn1"]),
        fold_bn(params["conv2"], params["bn2"]),
        (w6.T, b6[None, :]),
    ]


# ----------------------------------------------------------------------------
# Pure-JAX reference (f32, eval-mode semantics) for a numeric sanity check.
# ----------------------------------------------------------------------------
def ref_forward(x, folded):
    (w1, b1), (w2, b2), (w3, b3), (w4, b4), (w5, b5), (w6, b6) = folded
    hp = "highest"
    h = jnp.maximum(jnp.einsum("bnc,ck->bnk", x, w1, precision=hp) + b1, 0.0)
    h = jnp.maximum(jnp.einsum("bnc,ck->bnk", h, w2, precision=hp) + b2, 0.0)
    h = jnp.einsum("bnc,ck->bnk", h, w3, precision=hp) + b3
    g = jnp.max(h, axis=1)                                           # (B, 512)
    g = jnp.maximum(jnp.einsum("bc,ck->bk", g, w4, precision=hp) + b4[0], 0.0)
    g = jnp.einsum("bc,ck->bk", g, w5, precision=hp) + b5[0]
    return jnp.einsum("bc,ck->bk", g, w6, precision=hp) + b6[0]


if __name__ == "__main__":
    key = jax.random.PRNGKey(0)
    kx, kp = jax.random.split(key)

    B, N = 2, 16                       # small: 2 batches of 16 points, xyz
    x = jax.random.normal(kx, (B, N, 3), jnp.float32)

    params = init_params(kp)
    folded = fold_all(params)

    out = pose_t_v2_pallas(x, folded)
    out = jax.block_until_ready(out)

    ref = jax.block_until_ready(ref_forward(x, folded))
    # bf16 MXU inputs (and bf16 epilogues on v6e/v7x) with f32 head: compare
    # with a relaxed tolerance.
    np.testing.assert_allclose(np.asarray(out), np.asarray(ref),
                               rtol=2e-2, atol=2e-2)
    assert out.shape == (B, 3)
    print("KERNEL_OK")
</pallas_src>

<mosaic_0001>
module attributes {stable_mosaic.version = 11 : i64} {
  func.func @kernel(%arg0: i32, %arg1: i32, %arg2: memref<2x16x8xf32, #tpu.memory_space<vmem>>, %arg3: memref<8x128xf32, #tpu.memory_space<vmem>>, %arg4: memref<1x128xf32, #tpu.memory_space<vmem>>, %arg5: memref<128x256xbf16, #tpu.memory_space<vmem>>, %arg6: memref<1x256xf32, #tpu.memory_space<vmem>>, %arg7: memref<256x512xbf16, #tpu.memory_space<vmem>>, %arg8: memref<1x512xf32, #tpu.memory_space<vmem>>, %arg9: memref<512x256xf32, #tpu.memory_space<vmem>>, %arg10: memref<1x256xf32, #tpu.memory_space<vmem>>, %arg11: memref<256x128xf32, #tpu.memory_space<vmem>>, %arg12: memref<1x128xf32, #tpu.memory_space<vmem>>, %arg13: memref<128x128xf32, #tpu.memory_space<vmem>>, %arg14: memref<1x128xf32, #tpu.memory_space<vmem>>, %arg15: memref<2x128xf32, #tpu.memory_space<vmem>>, %arg16: memref<2x512xf32, #tpu.memory_space<vmem>>) attributes {dimension_semantics = [#tpu.dimension_semantics<parallel>, #tpu.dimension_semantics<arbitrary>], iteration_bounds = array<i64: 1, 1>, scalar_prefetch = 0 : i64, scratch_operands = 1 : i64, tpu.core_type = #tpu.core_type<tc>, window_params = [{transform_indices = @transform_0, window_bounds = array<i64: 2, 16, 8>}, {pipeline_mode = #tpu.pipeline_mode<synchronous>, transform_indices = @transform_1, window_bounds = array<i64: 8, 128>}, {pipeline_mode = #tpu.pipeline_mode<synchronous>, transform_indices = @transform_2, window_bounds = array<i64: 1, 128>}, {pipeline_mode = #tpu.pipeline_mode<synchronous>, transform_indices = @transform_3, window_bounds = array<i64: 128, 256>}, {pipeline_mode = #tpu.pipeline_mode<synchronous>, transform_indices = @transform_4, window_bounds = array<i64: 1, 256>}, {pipeline_mode = #tpu.pipeline_mode<synchronous>, transform_indices = @transform_5, window_bounds = array<i64: 256, 512>}, {pipeline_mode = #tpu.pipeline_mode<synchronous>, transform_indices = @transform_6, window_bounds = array<i64: 1, 512>}, {pipeline_mode = #tpu.pipeline_mode<synchronous>, transform_indices = @transform_7, window_bounds = array<i64: 512, 256>}, {pipeline_mode = #tpu.pipeline_mode<synchronous>, transform_indices = @transform_8, window_bounds = array<i64: 1, 256>}, {pipeline_mode = #tpu.pipeline_mode<synchronous>, transform_indices = @transform_9, window_bounds = array<i64: 256, 128>}, {pipeline_mode = #tpu.pipeline_mode<synchronous>, transform_indices = @transform_10, window_bounds = array<i64: 1, 128>}, {pipeline_mode = #tpu.pipeline_mode<synchronous>, transform_indices = @transform_11, window_bounds = array<i64: 128, 128>}, {pipeline_mode = #tpu.pipeline_mode<synchronous>, transform_indices = @transform_12, window_bounds = array<i64: 1, 128>}, {transform_indices = @transform_13, window_bounds = array<i64: 2, 128>}]} {
    %c0 = arith.constant 0 : index
    %c0_0 = arith.constant 0 : index
    %c0_1 = arith.constant 0 : index
    %0 = vector.load %arg2[%c0, %c0_0, %c0_1] : memref<2x16x8xf32, #tpu.memory_space<vmem>>, vector<2x16x8xf32>
    %c0_2 = arith.constant 0 : index
    %c0_3 = arith.constant 0 : index
    %1 = vector.load %arg3[%c0_2, %c0_3] : memref<8x128xf32, #tpu.memory_space<vmem>>, vector<8x128xf32>
    %2 = vector.extract_strided_slice %0 {offsets = [0, 0, 0], sizes = [2, 16, 1], strides = [1, 1, 1]} : vector<2x16x8xf32> to vector<2x16x1xf32>
    %3 = vector.extract_strided_slice %1 {offsets = [0, 0], sizes = [1, 128], strides = [1, 1]} : vector<8x128xf32> to vector<1x128xf32>
    %4 = vector.shape_cast %3 : vector<1x128xf32> to vector<1x1x128xf32>
    %5 = vector.broadcast %2 : vector<2x16x1xf32> to vector<2x16x128xf32>
    %6 = vector.broadcast %4 : vector<1x1x128xf32> to vector<2x16x128xf32>
    %7 = arith.mulf %5, %6 : vector<2x16x128xf32>
    %8 = vector.extract_strided_slice %0 {offsets = [0, 0, 1], sizes = [2, 16, 1], strides = [1, 1, 1]} : vector<2x16x8xf32> to vector<2x16x1xf32>
    %9 = vector.extract_strided_slice %1 {offsets = [1, 0], sizes = [1, 128], strides = [1, 1]} : vector<8x128xf32> to vector<1x128xf32>
    %10 = vector.shape_cast %9 : vector<1x128xf32> to vector<1x1x128xf32>
    %11 = vector.broadcast %8 : vector<2x16x1xf32> to vector<2x16x128xf32>
    %12 = vector.broadcast %10 : vector<1x1x128xf32> to vector<2x16x128xf32>
    %13 = arith.mulf %11, %12 : vector<2x16x128xf32>
    %14 = arith.addf %7, %13 : vector<2x16x128xf32>
    %15 = vector.extract_strided_slice %0 {offsets = [0, 0, 2], sizes = [2, 16, 1], strides = [1, 1, 1]} : vector<2x16x8xf32> to vector<2x16x1xf32>
    %16 = vector.extract_strided_slice %1 {offsets = [2, 0], sizes = [1, 128], strides = [1, 1]} : vector<8x128xf32> to vector<1x128xf32>
    %17 = vector.shape_cast %16 : vector<1x128xf32> to vector<1x1x128xf32>
    %18 = vector.broadcast %15 : vector<2x16x1xf32> to vector<2x16x128xf32>
    %19 = vector.broadcast %17 : vector<1x1x128xf32> to vector<2x16x128xf32>
    %20 = arith.mulf %18, %19 : vector<2x16x128xf32>
    %21 = arith.addf %14, %20 : vector<2x16x128xf32>
    %c0_4 = arith.constant 0 : index
    %c0_5 = arith.constant 0 : index
    %22 = vector.load %arg4[%c0_4, %c0_5] : memref<1x128xf32, #tpu.memory_space<vmem>>, vector<1x128xf32>
    %23 = vector.shape_cast %22 : vector<1x128xf32> to vector<1x1x128xf32>
    %24 = vector.broadcast %23 : vector<1x1x128xf32> to vector<2x16x128xf32>
    %25 = arith.addf %21, %24 : vector<2x16x128xf32>
    %cst = arith.constant 0.000000e+00 : f32
    %26 = vector.broadcast %cst : f32 to vector<2x16x128xf32>
    %27 = arith.maximumf %25, %26 : vector<2x16x128xf32>
    %28 = vector.shape_cast %27 : vector<2x16x128xf32> to vector<32x128xf32>
    %29 = arith.truncf %28 : vector<32x128xf32> to vector<32x128xbf16>
    %c0_6 = arith.constant 0 : index
    %c0_7 = arith.constant 0 : index
    %30 = vector.load %arg5[%c0_6, %c0_7] : memref<128x256xbf16, #tpu.memory_space<vmem>>, vector<128x256xbf16>
    %cst_8 = arith.constant dense<0.000000e+00> : vector<32x256xf32>
    %31 = tpu.matmul %29, %30, %cst_8 {dimension_numbers = #tpu.dot_dimension_numbers<[1], [0], [0], [1], [0, 0, 1, 1], [], []>} : vector<32x128xbf16>, vector<128x256xbf16>, vector<32x256xf32> -> vector<32x256xf32>
    %c0_9 = arith.constant 0 : index
    %c0_10 = arith.constant 0 : index
    %32 = vector.load %arg6[%c0_9, %c0_10] : memref<1x256xf32, #tpu.memory_space<vmem>>, vector<1x256xf32>
    %33 = vector.broadcast %32 : vector<1x256xf32> to vector<32x256xf32>
    %34 = arith.addf %31, %33 : vector<32x256xf32>
    %cst_11 = arith.constant 0.000000e+00 : f32
    %35 = vector.broadcast %cst_11 : f32 to vector<32x256xf32>
    %36 = arith.maximumf %34, %35 : vector<32x256xf32>
    %37 = arith.truncf %36 : vector<32x256xf32> to vector<32x256xbf16>
    %c0_12 = arith.constant 0 : index
    %c0_13 = arith.constant 0 : index
    %38 = vector.load %arg7[%c0_12, %c0_13] : memref<256x512xbf16, #tpu.memory_space<vmem>>, vector<256x512xbf16>
    %cst_14 = arith.constant dense<0.000000e+00> : vector<32x512xf32>
    %39 = tpu.matmul %37, %38, %cst_14 {dimension_numbers = #tpu.dot_dimension_numbers<[1], [0], [0], [1], [0, 0, 1, 1], [], []>} : vector<32x256xbf16>, vector<256x512xbf16>, vector<32x512xf32> -> vector<32x512xf32>
    %40 = vector.shape_cast %39 : vector<32x512xf32> to vector<2x16x512xf32>
    %cst_15 = arith.constant dense<0xFF800000> : vector<2x512xf32>
    %41 = vector.multi_reduction <maximumf>, %40, %cst_15 [1] : vector<2x16x512xf32> to vector<2x512xf32>
    %c0_i32 = arith.constant 0 : i32
    %42 = arith.cmpi eq, %arg1, %c0_i32 : i32
    %43 = arith.extui %42 : i1 to i32
    %c0_i32_16 = arith.constant 0 : i32
    %44 = arith.cmpi ne, %43, %c0_i32_16 : i32
    scf.if %44 {
      %cst_23 = arith.constant 0xFF800000 : f32
      %51 = vector.broadcast %cst_23 : f32 to vector<2x512xf32>
      %c0_24 = arith.constant 0 : index
      %c0_25 = arith.constant 0 : index
      %52 = vector.load %arg16[%c0_24, %c0_25] : memref<2x512xf32, #tpu.memory_space<vmem>>, vector<2x512xf32>
      tpu.vector_store %arg16[%c0_24, %c0_25], %51 {strides = array<i32>} : memref<2x512xf32, #tpu.memory_space<vmem>>, vector<2x512xf32>,
    } else {
    }
    %c0_17 = arith.constant 0 : index
    %c0_18 = arith.constant 0 : index
    %45 = vector.load %arg16[%c0_17, %c0_18] : memref<2x512xf32, #tpu.memory_space<vmem>>, vector<2x512xf32>
    %46 = arith.maximumf %45, %41 : vector<2x512xf32>
    %c0_19 = arith.constant 0 : index
    %c0_20 = arith.constant 0 : index
    %47 = vector.load %arg16[%c0_19, %c0_20] : memref<2x512xf32, #tpu.memory_space<vmem>>, vector<2x512xf32>
    tpu.vector_store %arg16[%c0_19, %c0_20], %46 {strides = array<i32>} : memref<2x512xf32, #tpu.memory_space<vmem>>, vector<2x512xf32>,
    %c0_i32_21 = arith.constant 0 : i32
    %48 = arith.cmpi eq, %arg1, %c0_i32_21 : i32
    %49 = arith.extui %48 : i1 to i32
    %c0_i32_22 = arith.constant 0 : i32
    %50 = arith.cmpi ne, %49, %c0_i32_22 : i32
    scf.if %50 {
      %c0_23 = arith.constant 0 : index
      %c0_24 = arith.constant 0 : index
      %51 = vector.load %arg16[%c0_23, %c0_24] : memref<2x512xf32, #tpu.memory_space<vmem>>, vector<2x512xf32>
      %c0_25 = arith.constant 0 : index
      %c0_26 = arith.constant 0 : index
      %52 = vector.load %arg8[%c0_25, %c0_26] : memref<1x512xf32, #tpu.memory_space<vmem>>, vector<1x512xf32>
      %53 = vector.broadcast %52 : vector<1x512xf32> to vector<2x512xf32>
      %54 = arith.addf %51, %53 : vector<2x512xf32>
      %c0_27 = arith.constant 0 : index
      %c0_28 = arith.constant 0 : index
      %55 = vector.load %arg9[%c0_27, %c0_28] : memref<512x256xf32, #tpu.memory_space<vmem>>, vector<512x256xf32>
      %cst_29 = arith.constant dense<0.000000e+00> : vector<2x256xf32>
      %56 = tpu.matmul %54, %55, %cst_29 {dimension_numbers = #tpu.dot_dimension_numbers<[1], [0], [0], [1], [0, 0, 1, 1], [], []>} : vector<2x512xf32>, vector<512x256xf32>, vector<2x256xf32> -> vector<2x256xf32>
      %c0_30 = arith.constant 0 : index
      %c0_31 = arith.constant 0 : index
      %57 = vector.load %arg10[%c0_30, %c0_31] : memref<1x256xf32, #tpu.memory_space<vmem>>, vector<1x256xf32>
      %58 = vector.broadcast %57 : vector<1x256xf32> to vector<2x256xf32>
      %59 = arith.addf %56, %58 : vector<2x256xf32>
      %cst_32 = arith.constant 0.000000e+00 : f32
      %60 = vector.broadcast %cst_32 : f32 to vector<2x256xf32>
      %61 = arith.maximumf %59, %60 : vector<2x256xf32>
      %c0_33 = arith.constant 0 : index
      %c0_34 = arith.constant 0 : index
      %62 = vector.load %arg11[%c0_33, %c0_34] : memref<256x128xf32, #tpu.memory_space<vmem>>, vector<256x128xf32>
      %cst_35 = arith.constant dense<0.000000e+00> : vector<2x128xf32>
      %63 = tpu.matmul %61, %62, %cst_35 {dimension_numbers = #tpu.dot_dimension_numbers<[1], [0], [0], [1], [0, 0, 1, 1], [], []>} : vector<2x256xf32>, vector<256x128xf32>, vector<2x128xf32> -> vector<2x128xf32>
      %c0_36 = arith.constant 0 : index
      %c0_37 = arith.constant 0 : index
      %64 = vector.load %arg12[%c0_36, %c0_37] : memref<1x128xf32, #tpu.memory_space<vmem>>, vector<1x128xf32>
      %65 = vector.broadcast %64 : vector<1x128xf32> to vector<2x128xf32>
      %66 = arith.addf %63, %65 : vector<2x128xf32>
      %c0_38 = arith.constant 0 : index
      %c0_39 = arith.constant 0 : index
      %67 = vector.load %arg13[%c0_38, %c0_39] : memref<128x128xf32, #tpu.memory_space<vmem>>, vector<128x128xf32>
      %cst_40 = arith.constant dense<0.000000e+00> : vector<2x128xf32>
      %68 = tpu.matmul %66, %67, %cst_40 {dimension_numbers = #tpu.dot_dimension_numbers<[1], [0], [0], [1], [0, 0, 1, 1], [], []>} : vector<2x128xf32>, vector<128x128xf32>, vector<2x128xf32> -> vector<2x128xf32>
      %c0_41 = arith.constant 0 : index
      %c0_42 = arith.constant 0 : index
      %69 = vector.load %arg14[%c0_41, %c0_42] : memref<1x128xf32, #tpu.memory_space<vmem>>, vector<1x128xf32>
      %70 = vector.broadcast %69 : vector<1x128xf32> to vector<2x128xf32>
      %71 = arith.addf %68, %70 : vector<2x128xf32>
      %c0_43 = arith.constant 0 : index
      %c0_44 = arith.constant 0 : index
      %72 = vector.load %arg15[%c0_43, %c0_44] : memref<2x128xf32, #tpu.memory_space<vmem>>, vector<2x128xf32>
      tpu.vector_store %arg15[%c0_43, %c0_44], %71 {strides = array<i32>} : memref<2x128xf32, #tpu.memory_space<vmem>>, vector<2x128xf32>,
    } else {
    }
    return
  }
  func.func @transform_0(%arg0: i32, %arg1: i32) -> (i32, i32, i32) {
    %c0_i32 = arith.constant 0 : i32
    %c0_i32_0 = arith.constant 0 : i32
    return %arg0, %arg1, %c0_i32 : i32, i32, i32
  }
  func.func @transform_1(%arg0: i32, %arg1: i32) -> (i32, i32) {
    %c0_i32 = arith.constant 0 : i32
    %c0_i32_0 = arith.constant 0 : i32
    %c0_i32_1 = arith.constant 0 : i32
    return %c0_i32, %c0_i32_0 : i32, i32
  }
  func.func @transform_2(%arg0: i32, %arg1: i32) -> (i32, i32) {
    %c0_i32 = arith.constant 0 : i32
    %c0_i32_0 = arith.constant 0 : i32
    %c0_i32_1 = arith.constant 0 : i32
    return %c0_i32, %c0_i32_0 : i32, i32
  }
  func.func @transform_3(%arg0: i32, %arg1: i32) -> (i32, i32) {
    %c0_i32 = arith.constant 0 : i32
    %c0_i32_0 = arith.constant 0 : i32
    %c0_i32_1 = arith.constant 0 : i32
    return %c0_i32, %c0_i32_0 : i32, i32
  }
  func.func @transform_4(%arg0: i32, %arg1: i32) -> (i32, i32) {
    %c0_i32 = arith.constant 0 : i32
    %c0_i32_0 = arith.constant 0 : i32
    %c0_i32_1 = arith.constant 0 : i32
    return %c0_i32, %c0_i32_0 : i32, i32
  }
  func.func @transform_5(%arg0: i32, %arg1: i32) -> (i32, i32) {
    %c0_i32 = arith.constant 0 : i32
    %c0_i32_0 = arith.constant 0 : i32
    %c0_i32_1 = arith.constant 0 : i32
    return %c0_i32, %c0_i32_0 : i32, i32
  }
  func.func @transform_6(%arg0: i32, %arg1: i32) -> (i32, i32) {
    %c0_i32 = arith.constant 0 : i32
    %c0_i32_0 = arith.constant 0 : i32
    %c0_i32_1 = arith.constant 0 : i32
    return %c0_i32, %c0_i32_0 : i32, i32
  }
  func.func @transform_7(%arg0: i32, %arg1: i32) -> (i32, i32) {
    %c0_i32 = arith.constant 0 : i32
    %c0_i32_0 = arith.constant 0 : i32
    %c0_i32_1 = arith.constant 0 : i32
    return %c0_i32, %c0_i32_0 : i32, i32
  }
  func.func @transform_8(%arg0: i32, %arg1: i32) -> (i32, i32) {
    %c0_i32 = arith.constant 0 : i32
    %c0_i32_0 = arith.constant 0 : i32
    %c0_i32_1 = arith.constant 0 : i32
    return %c0_i32, %c0_i32_0 : i32, i32
  }
  func.func @transform_9(%arg0: i32, %arg1: i32) -> (i32, i32) {
    %c0_i32 = arith.constant 0 : i32
    %c0_i32_0 = arith.constant 0 : i32
    %c0_i32_1 = arith.constant 0 : i32
    return %c0_i32, %c0_i32_0 : i32, i32
  }
  func.func @transform_10(%arg0: i32, %arg1: i32) -> (i32, i32) {
    %c0_i32 = arith.constant 0 : i32
    %c0_i32_0 = arith.constant 0 : i32
    %c0_i32_1 = arith.constant 0 : i32
    return %c0_i32, %c0_i32_0 : i32, i32
  }
  func.func @transform_11(%arg0: i32, %arg1: i32) -> (i32, i32) {
    %c0_i32 = arith.constant 0 : i32
    %c0_i32_0 = arith.constant 0 : i32
    %c0_i32_1 = arith.constant 0 : i32
    return %c0_i32, %c0_i32_0 : i32, i32
  }
  func.func @transform_12(%arg0: i32, %arg1: i32) -> (i32, i32) {
    %c0_i32 = arith.constant 0 : i32
    %c0_i32_0 = arith.constant 0 : i32
    %c0_i32_1 = arith.constant 0 : i32
    return %c0_i32, %c0_i32_0 : i32, i32
  }
  func.func @transform_13(%arg0: i32, %arg1: i32) -> (i32, i32) {
    %c0_i32 = arith.constant 0 : i32
    %c0_i32_0 = arith.constant 0 : i32
    return %arg0, %c0_i32 : i32, i32
  }
}

</mosaic_0001>

<bundles_post_ra>
// kernel: tpu_custom_call.1
= control target key start
LH: loop header
LB: loop body
LE: loop exit
PB: predicated region body
PF: predicated region fallthrough
CT: control target
= control target key end

     0   :  { %18 = vsyncpa [#allocation4], 0  ;;  %s2464_s0 = inlined_call_operand.vmem [shape: f32[2,16,8], index: 0, kind: input, shape index: {}]   ;;  %s2465_s1 = inlined_call_operand.vmem [shape: f32[8,128], index: 1, kind: input, shape index: {}]   ;;  %s2466_s2 = inlined_call_operand.vmem [shape: f32[1,128], index: 2, kind: input, shape index: {}]   ;;  %s2467_s3 = inlined_call_operand.hbm [shape: bf16[128,256], index: 3, kind: input, shape index: {}]   ;;  %s2468_s4 = inlined_call_operand.vmem [shape: f32[1,256], index: 4, kind: input, shape index: {}]   ;;  %s2469_s5 = inlined_call_operand.hbm [shape: bf16[256,512], index: 5, kind: input, shape index: {}]   ;;  %s2470_s6 = inlined_call_operand.vmem [shape: f32[1,512], index: 6, kind: input, shape index: {}]   ;;  %s2471_s7 = inlined_call_operand.hbm [shape: f32[512,256], index: 7, kind: input, shape index: {}]   ;;  %s2472_s8 = inlined_call_operand.vmem [shape: f32[1,256], index: 8, kind: input, shape index: {}]   ;;  %s2473_s9 = inlined_call_operand.hbm [shape: f32[256,128], index: 9, kind: input, shape index: {}]   ;;  %s2474_s10 = inlined_call_operand.vmem [shape: f32[1,128], index: 10, kind: input, shape index: {}]   ;;  %s2475_s11 = inlined_call_operand.hbm [shape: f32[128,128], index: 11, kind: input, shape index: {}]   ;;  %s2476_s12 = inlined_call_operand.vmem [shape: f32[1,128], index: 12, kind: input, shape index: {}]   ;;  %s2477_s13 = inlined_call_operand.hbm [shape: f32[2,128], index: 13, kind: output, shape index: {}]  }
   0x1   :  { %19 = vsyncpa [#allocation7], 0 }
   0x2   :  { %20 = vsyncpa [#allocation10], 0 }
   0x3   :  { %21 = vsyncpa [#allocation5], 0  ;;  %s2214_s25 = smov [#allocation6]   ;;  %s2074_s29 = scalar_lea.hbm %s2469_s5, 8192 }
   0x4   :  { %s47_s26 = sshll.u32 %s2214_s25, 4  ;;  %p2075_p0 = scmp.ne.s32.totalorder %s2469_s5, %s2074_s29  ;;  %s48_s26 = int_to_ptr.vmem [resolvable:$true] %s47_s26 }
   0x5   :  { %p2078_p1 = scmp.lt.u32.totalorder %s2074_s29, %s2469_s5 }
   0x7   :  { %p2080_p2 = pnand %p2078_p1, %p2075_p0 }
   0x9   :  { %2083 = shalt.err (!%p2080_p2)
}
   0xa   :  { %s2084_s17 = scalar_lea.vmem %s48_s26, 8192  ;;  %p2089_p4 = scmp.lt.s32.totalorder %s48_s26, %s48_s26 }
   0xb   :  { %p2085_p3 = scmp.ne.s32.totalorder %s48_s26, %s2084_s17  ;;  %p2090_p5 = scmp.lt.s32.totalorder %s2084_s17, %s2084_s17 }
   0xd   :  { %p2091_p6 = por %p2090_p5, %p2089_p4 }
   0xf   :  { %p2092_p7 = pnand %p2091_p6, %p2085_p3 }
  0x11   :  { %2095 = shalt.err (!%p2092_p7)
}
  0x12   :  { %s2215_s18 = smov 256   ;;  %s2216_s19 = smov 16  }
  0x13   :  { %53 = dma.hbm_to_vmem [thread:$0]  %s2469_s5, 8192, %s48_s26, [#allocation7], %s2215_s18, %s2215_s18, %s2216_s19  }
  0x14   :  { %s2217_s22 = smov [#allocation9]   ;;  %s2218_s24 = smov [#allocation3]  }
  0x15   :  { %s75_s23 = sshll.u32 %s2217_s22, 4  ;;  %s33_s25 = sshll.u32 %s2218_s24, 4  ;;  %s76_s23 = int_to_ptr.vmem [resolvable:$true] %s75_s23  ;;  %s34_s25 = int_to_ptr.vmem [resolvable:$true] %s33_s25 }
  0x16   :  { %s2096_s29 = scalar_lea.hbm %s2473_s9, 4096 }
  0x17   :  { %p2097_p8 = scmp.ne.s32.totalorder %s2473_s9, %s2096_s29  ;;  %p2100_p9 = scmp.lt.u32.totalorder %s2096_s29, %s2473_s9 }
  0x19   :  { %p2102_p10 = pnand %p2100_p9, %p2097_p8 }
  0x1b   :  { %2105 = shalt.err (!%p2102_p10)
}
  0x1c   :  { %s2106_s5 = scalar_lea.vmem %s76_s23, 4096  ;;  %p2111_p12 = scmp.lt.s32.totalorder %s76_s23, %s76_s23 }
  0x1d   :  { %p2107_p11 = scmp.ne.s32.totalorder %s76_s23, %s2106_s5  ;;  %p2112_p13 = scmp.lt.s32.totalorder %s2106_s5, %s2106_s5 }
  0x1f   :  { %p2113_p0 = por %p2112_p13, %p2111_p12 }
  0x21   :  { %p2114_p1 = pnand %p2113_p0, %p2107_p11 }
  0x23   :  { %2117 = shalt.err (!%p2114_p1)
}
  0x24   :  { %s2219_s26 = smov 128   ;;  %s2220_s17 = smov 8  }
  0x25   :  { %81 = dma.hbm_to_vmem [thread:$0]  %s2473_s9, 4096, %s76_s23, [#allocation10], %s2219_s26, %s2219_s26, %s2220_s17  }
  0x26   :  { %s2118_s27 = scalar_lea.hbm %s2467_s3, 2048 }
  0x27   :  { %p2119_p2 = scmp.ne.s32.totalorder %s2467_s3, %s2118_s27  ;;  %p2122_p3 = scmp.lt.u32.totalorder %s2118_s27, %s2467_s3 }
  0x29   :  { %p2124_p4 = pnand %p2122_p3, %p2119_p2 }
  0x2b   :  { %2127 = shalt.err (!%p2124_p4)
}
  0x2c   :  { %s2128_s15 = scalar_lea.vmem %s34_s25, 2048  ;;  %p2133_p6 = scmp.lt.s32.totalorder %s34_s25, %s34_s25 }
  0x2d   :  { %p2129_p5 = scmp.ne.s32.totalorder %s34_s25, %s2128_s15  ;;  %p2134_p7 = scmp.lt.s32.totalorder %s2128_s15, %s2128_s15 }
  0x2f   :  { %p2135_p8 = por %p2134_p7, %p2133_p6 }
  0x31   :  { %p2136_p9 = pnand %p2135_p8, %p2129_p5 }
  0x33   :  { %2139 = shalt.err (!%p2136_p9)
}
  0x34   :  { %39 = dma.hbm_to_vmem [thread:$0]  %s2467_s3, 2048, %s34_s25, [#allocation4], %s2219_s26, %s2219_s26, %s2220_s17  }
  0x35   :  { %s2221_s16 = smov [#allocation8]   ;;  %s2222_s20 = smov [#allocation11]  }
  0x36   :  { %s61_s5 = sshll.u32 %s2221_s16, 4  ;;  %s89_s21 = sshll.u32 %s2222_s20, 4  ;;  %s62_s5 = int_to_ptr.vmem [resolvable:$true] %s61_s5  ;;  %s90_s21 = int_to_ptr.vmem [resolvable:$true] %s89_s21 }
  0x37   :  { %s2140_s27 = scalar_lea.hbm %s2471_s7, 16384 }
  0x38   :  { %p2141_p10 = scmp.ne.s32.totalorder %s2471_s7, %s2140_s27  ;;  %p2144_p11 = scmp.lt.u32.totalorder %s2140_s27, %s2471_s7 }
  0x3a   :  { %p2146_p12 = pnand %p2144_p11, %p2141_p10 }
  0x3c   :  { %2149 = shalt.err (!%p2146_p12)
}
  0x3d   :  { %s2150_s3 = scalar_lea.vmem %s62_s5, 16384  ;;  %p2155_p0 = scmp.lt.s32.totalorder %s62_s5, %s62_s5 }
  0x3e   :  { %p2151_p13 = scmp.ne.s32.totalorder %s62_s5, %s2150_s3  ;;  %p2156_p1 = scmp.lt.s32.totalorder %s2150_s3, %s2150_s3 }
  0x40   :  { %p2157_p2 = por %p2156_p1, %p2155_p0 }
  0x42   :  { %p2158_p3 = pnand %p2157_p2, %p2151_p13 }
  0x44   :  { %2161 = shalt.err (!%p2158_p3)
}
  0x45   :  { %67 = dma.hbm_to_vmem [thread:$0]  %s2471_s7, 16384, %s62_s5, [#allocation7], %s2215_s18, %s2215_s18, %s2216_s19  }
  0x46   :  { %s2162_s16 = scalar_lea.hbm %s2475_s11, 2048 }
  0x47   :  { %p2163_p4 = scmp.ne.s32.totalorder %s2475_s11, %s2162_s16  ;;  %p2166_p5 = scmp.lt.u32.totalorder %s2162_s16, %s2475_s11 }
  0x49   :  { %p2168_p6 = pnand %p2166_p5, %p2163_p4 }
  0x4b   :  { %2171 = shalt.err (!%p2168_p6)
}
  0x4c   :  { %s2172_s28 = scalar_lea.vmem %s90_s21, 2048  ;;  %p2177_p8 = scmp.lt.s32.totalorder %s90_s21, %s90_s21 }
  0x4d   :  { %p2173_p7 = scmp.ne.s32.totalorder %s90_s21, %s2172_s28  ;;  %p2178_p9 = scmp.lt.s32.totalorder %s2172_s28, %s2172_s28 }
  0x4f   :  { %p2179_p10 = por %p2178_p9, %p2177_p8 }
  0x51   :  { %p2180_p11 = pnand %p2179_p10, %p2173_p7 }
  0x53   :  { %2183 = shalt.err (!%p2180_p11)
}
  0x54   :  { %95 = dma.hbm_to_vmem [thread:$0]  %s2475_s11, 2048, %s90_s21, [#allocation10], %s2219_s26, %s2219_s26, %s2220_s17  }
  0x55   :  { %2206 = dma.done.wait [#allocation4], 2048  }
  0x56   :  { %2207 = vsyncadd [#allocation4], 4294965248 }
  0x57   :  { %2208 = dma.done.wait [#allocation7], 24576  }
  0x58   :  { %2209 = vsyncadd [#allocation7], 4294942720 }
  0x59   :  { %2210 = dma.done.wait [#allocation10], 6144  }
  0x5a   :  { %2211 = vsyncadd [#allocation10], 4294961152  ;;  %v2223_v0 = vmov 1   ;;  %v2224_v1 = vmov 0   ;;  %v114_v2 = vld [vmem:[%s2464_s0] sm:$0xff]  ;;  %v115_v3 = vld [vmem:[%s2464_s0 + $0x8] sm:$0xff]  ;;  %v139_v51 = vlaneseq }
  0x5b   :  { %1946 = vset.pattern.permute.xlu1 %v2223_v0  ;;  %1945 = vset.pattern.permute.xlu0 %v2224_v1  ;;  %v1954_v4 = vld [vmem:[#allocation3 + $0x4] ss:$8 sps:$4 sm:$0xff]   ;;  %v1956_v5 = vld [vmem:[#allocation3] ss:$8 sps:$4 sm:$0xff]   ;;  %v1957_v6 = vld [vmem:[#allocation3 + $0x14] ss:$8 sps:$4 sm:$0xff]  }
  0x5c   :  { %360 = vmatprep.mubr.bf16.mxu0 %v2224_v1  ;;  %148 = vperm.xlu1 %1946, %v114_v2   ;;  %v2225_v7 = vmov 2   ;;  %v1959_v8 = vld [vmem:[#allocation3 + $0x10] ss:$8 sps:$4 sm:$0xff]   ;;  %v1960_v9 = vld [vmem:[#allocation3 + $0x24] ss:$8 sps:$4 sm:$0xff]   ;;  %v2392_v52 = vshrl.u32 %v139_v51, 7 }
  0x5d   :  { %121 = vperm.xlu0 %1945, %v114_v2   ;;  %328 = vmatprep.subr.bf16.mxu0 %v1954_v4  ;;  %v116_v10 = vld [vmem:[%s2464_s0 + $0x10] sm:$0xff]  ;;  %v117_v11 = vld [vmem:[%s2464_s0 + $0x18] sm:$0xff]  ;;  %v1962_v12 = vld [vmem:[#allocation3 + $0x20] ss:$8 sps:$4 sm:$0xff]   ;;  %vm992_vm0 = vcmask 1041409   ;;  %vm994_vm1 = vcmask 1043459  }
  0x5e   :  { %329 = vmatpush1.bf16.msra.mxu0 %v1956_v5  ;;  %v1963_v13 = vld [vmem:[#allocation3 + $0x34] ss:$8 sps:$4 sm:$0xff]   ;;  %v1965_v14 = vld [vmem:[#allocation3 + $0x30] ss:$8 sps:$4 sm:$0xff]   ;;  %v1966_v15 = vld [vmem:[#allocation3 + $0x44] ss:$8 sps:$4 sm:$0xff]  }
  0x5f   :  { %330 = vmatprep.subr.bf16.mxu0 %v1957_v6  ;;  %v1968_v16 = vld [vmem:[#allocation3 + $0x40] ss:$8 sps:$4 sm:$0xff]   ;;  %v1969_v17 = vld [vmem:[#allocation3 + $0x54] ss:$8 sps:$4 sm:$0xff]   ;;  %v1971_v18 = vld [vmem:[#allocation3 + $0x50] ss:$8 sps:$4 sm:$0xff]  }
  0x60   :  { %152 = vperm.xlu1 %1946, %v115_v3   ;;  %v1972_v19 = vld [vmem:[#allocation3 + $0x64] ss:$8 sps:$4 sm:$0xff]   ;;  %v1974_v20 = vld [vmem:[#allocation3 + $0x60] ss:$8 sps:$4 sm:$0xff]   ;;  %v1975_v21 = vld [vmem:[#allocation3 + $0x74] ss:$8 sps:$4 sm:$0xff]  }
  0x61   :  { %1947 = vset.pattern.permute.xlu0 %v2225_v7  ;;  %v1977_v22 = vld [vmem:[#allocation3 + $0x70] ss:$8 sps:$4 sm:$0xff]   ;;  %v1978_v23 = vld [vmem:[#allocation6 + $0x4] ss:$16 sps:$4 sm:$0xff]   ;;  %v1982_v24 = vld [vmem:[#allocation6 + $0xc] ss:$16 sps:$4 sm:$0xff]  }
  0x62   :  { %176 = vperm.xlu0 %1947, %v114_v2   ;;  %331 = vmatpush1.bf16.msra.mxu0 %v1959_v8  ;;  %v1983_v25 = vld [vmem:[#allocation6] ss:$16 sps:$4 sm:$0xff]   ;;  %v1984_v26 = vld [vmem:[#allocation6 + $0x24] ss:$16 sps:$4 sm:$0xff]   ;;  %v2395_v53 = vsub.s32 1, %v2392_v52  ;;  %v2398_v54 = vsub.s32 0, %v2392_v52 }
  0x63   :  { %332 = vmatprep.subr.bf16.mxu0 %v1960_v9  ;;  %777 = vmatprep.subr.bf16.mxu1 %v1978_v23  ;;  %v1989_v27 = vld [vmem:[#allocation6 + $0x20] ss:$16 sps:$4 sm:$0xff]   ;;  %v1990_v28 = vld [vmem:[#allocation6 + $0x44] ss:$16 sps:$4 sm:$0xff]   ;;  %v193_v56 = vsub.s32 2, %v2392_v52  ;;  %vm996_vm2 = vcmask 1045509  }
  0x64   :  { %1949 = vset.pattern.permute.xlu1 %v2225_v7  ;;  %778 = vmatpush1.bf16.msra.mxu1 %v1983_v25  ;;  %v1995_v29 = vld [vmem:[#allocation6 + $0x40] ss:$16 sps:$4 sm:$0xff]   ;;  %v1996_v30 = vld [vmem:[#allocation6 + $0x64] ss:$16 sps:$4 sm:$0xff]   ;;  %v1980_v23 = vld [vmem:[#allocation6 + $0x8] ss:$16 sps:$4 sm:$0xff]  }
  0x65   :  { %180 = vperm.xlu1 %1949, %v115_v3   ;;  %779 = vmatprep.subr.bf16.mxu1 %v1984_v26  ;;  %v2001_v31 = vld [vmem:[#allocation6 + $0x60] ss:$16 sps:$4 sm:$0xff]   ;;  %v2002_v32 = vld [vmem:[#allocation6 + $0x84] ss:$16 sps:$4 sm:$0xff]   ;;  %v1988_v26 = vld [vmem:[#allocation6 + $0x2c] ss:$16 sps:$4 sm:$0xff]  }
  0x66   :  { %1948 = vset.pattern.permute.xlu0 %v2224_v1  ;;  %333 = vmatpush1.bf16.msra.mxu0 %v1962_v12  ;;  %v2007_v33 = vld [vmem:[#allocation6 + $0x80] ss:$16 sps:$4 sm:$0xff]   ;;  %v2008_v34 = vld [vmem:[#allocation6 + $0xa4] ss:$16 sps:$4 sm:$0xff]   ;;  %v2016_v51 = vld [vmem:[#allocation6 + $0xc8] ss:$16 sps:$4 sm:$0xff]  }
  0x67   :  { %126 = vperm.xlu0 %1948, %v115_v3   ;;  %334 = vmatprep.subr.bf16.mxu0 %v1963_v13  ;;  %v2013_v35 = vld [vmem:[#allocation6 + $0xa0] ss:$16 sps:$4 sm:$0xff]   ;;  %v2014_v36 = vld [vmem:[#allocation6 + $0xc4] ss:$16 sps:$4 sm:$0xff]   ;;  %vm998_vm3 = vcmask 1047559   ;;  %vm2228_vm4 = vmmov 0  }
  0x68   :  { %780 = vmatpush1.bf16.msra.mxu1 %v1989_v27  ;;  %v2019_v37 = vld [vmem:[#allocation6 + $0xc0] ss:$16 sps:$4 sm:$0xff]   ;;  %v2020_v38 = vld [vmem:[#allocation6 + $0xe4] ss:$16 sps:$4 sm:$0xff]   ;;  %s2230_s22 = smov [#allocation12]  }
  0x69   :  { %1950 = vset.pattern.permute.xlu1 %v2224_v1  ;;  %781 = vmatprep.subr.bf16.mxu1 %v1990_v28  ;;  %v2025_v39 = vld [vmem:[#allocation6 + $0xe0] ss:$16 sps:$4 sm:$0xff]   ;;  %v2026_v40 = vld [vmem:[#allocation6 + $0x104] ss:$16 sps:$4 sm:$0xff]   ;;  %s1559_s24 = sshll.u32 %s2230_s22, 4  ;;  %s1560_s24 = int_to_ptr.vmem [resolvable:$true] %s1559_s24 }
  0x6a   :  { %131 = vperm.xlu1 %1950, %v116_v10   ;;  %335 = vmatpush1.bf16.msra.mxu0 %v1965_v14  ;;  %v2031_v41 = vld [vmem:[#allocation6 + $0x100] ss:$16 sps:$4 sm:$0xff]   ;;  %v2032_v42 = vld [vmem:[#allocation6 + $0x124] ss:$16 sps:$4 sm:$0xff]   ;;  %s2184_s27 = scalar_lea.vmem %s1560_s24, 32  ;;  %p2189_p13 = scmp.lt.s32.totalorder %s1560_s24, %s1560_s24 }
  0x6b   :  { %136 = vperm.xlu0 %1948, %v117_v11   ;;  %336 = vmatprep.subr.bf16.mxu0 %v1966_v15  ;;  %v2037_v43 = vld [vmem:[#allocation6 + $0x120] ss:$16 sps:$4 sm:$0xff]   ;;  %v2038_v44 = vld [vmem:[#allocation6 + $0x144] ss:$16 sps:$4 sm:$0xff]   ;;  %p2185_p12 = scmp.ne.s32.totalorder %s1560_s24, %s2184_s27  ;;  %p2190_p0 = scmp.lt.s32.totalorder %s2184_s27, %s2184_s27 }
  0x6c   :  { %782 = vmatpush1.bf16.msra.mxu1 %v1995_v29  ;;  %v2043_v45 = vld [vmem:[#allocation6 + $0x140] ss:$16 sps:$4 sm:$0xff]   ;;  %v2044_v46 = vld [vmem:[#allocation6 + $0x164] ss:$16 sps:$4 sm:$0xff]  }
  0x6d   :  { %783 = vmatprep.subr.bf16.mxu1 %v1996_v30  ;;  %v2049_v47 = vld [vmem:[#allocation6 + $0x160] ss:$16 sps:$4 sm:$0xff]   ;;  %v2050_v48 = vld [vmem:[#allocation6 + $0x184] ss:$16 sps:$4 sm:$0xff]   ;;  %v1986_v30 = vld [vmem:[#allocation6 + $0x28] ss:$16 sps:$4 sm:$0xff]   ;;  %p2191_p1 = por %p2190_p0, %p2189_p13 }
  0x6e   :  { %1951 = vset.pattern.permute.xlu1 %v2223_v0  ;;  %337 = vmatpush1.bf16.msra.mxu0 %v1968_v16  ;;  %v2055_v49 = vld [vmem:[#allocation6 + $0x180] ss:$16 sps:$4 sm:$0xff]   ;;  %v2056_v50 = vld [vmem:[#allocation6 + $0x1a4] ss:$16 sps:$4 sm:$0xff]  }
  0x6f   :  { %1952 = vset.pattern.permute.xlu0 %v2225_v7  ;;  %156 = vperm.xlu1 %1951, %v116_v10   ;;  %v118_v55 = vld [vmem:[%s2465_s1] sm:$0xff]  ;;  %p2192_p2 = pnand %p2191_p1, %p2185_p12 }
  0x70   :  { %184 = vperm.xlu0 %1952, %v116_v10   ;;  %338 = vmatprep.subr.bf16.mxu0 %v1969_v17  ;;  %v166_v59 = vrot.slane %v118_v55, %v2395_v53  ;;  %v142_v60 = vrot.slane %v118_v55, %v2398_v54  ;;  %v194_v61 = vrot.slane %v118_v55, %v193_v56  ;;  %v1570_v10 = vld [vmem:[%s2466_s2] ss:$0 sm:$0xff]  ;;  %v2024_v55 = vld [vmem:[#allocation6 + $0xec] ss:$16 sps:$4 sm:$0xff]  }
  0x71   :  { %784 = vmatpush1.bf16.msra.mxu1 %v2001_v31 }
  0x72   :  { %339 = vmatpush1.bf16.msra.mxu0 %v1971_v18  ;;  %785 = vmatprep.subr.bf16.mxu1 %v2002_v32  ;;  %v1994_v32 = vld [vmem:[#allocation6 + $0x4c] ss:$16 sps:$4 sm:$0xff]  }
  0x73   :  { %160 = vperm.xlu1 %1951, %v117_v11   ;;  %340 = vmatprep.subr.bf16.mxu0 %v1972_v19 }
  0x75   :  { %786 = vmatpush1.bf16.msra.mxu1 %v2007_v33 }
  0x76   :  { %341 = vmatpush1.bf16.msra.mxu0 %v1974_v20  ;;  %787 = vmatprep.subr.bf16.mxu1 %v2008_v34 }
  0x77   :  { %1953 = vset.pattern.permute.xlu1 %v2225_v7  ;;  %342 = vmatprep.subr.bf16.mxu0 %v1975_v21 }
  0x78   :  { %188 = vperm.xlu1 %1953, %v117_v11  }
  0x79   :  { %788 = vmatpush1.bf16.msra.mxu1 %v2013_v35 }
  0x7a   :  { %343 = vmatpush1.bf16.msra.mxu0 %v1977_v22  ;;  %789 = vmatprep.subr.bf16.mxu1 %v2014_v36  ;;  %v1992_v36 = vld [vmem:[#allocation6 + $0x48] ss:$16 sps:$4 sm:$0xff]  }
  0x7b   :  { %830 = vmatprep.subr.bf16.mxu0 %v1982_v24 }
  0x7d   :  { %790 = vmatpush1.bf16.msra.mxu1 %v2019_v37 }
  0x7e   :  { %791 = vmatprep.subr.bf16.mxu1 %v2020_v38 }
  0x81   :  { %792 = vmatpush1.bf16.msra.mxu1 %v2025_v39  ;;  %v2000_v39 = vld [vmem:[#allocation6 + $0x6c] ss:$16 sps:$4 sm:$0xff]  }
  0x82   :  { %793 = vmatprep.subr.bf16.mxu1 %v2026_v40 }
  0x85   :  { %794 = vmatpush1.bf16.msra.mxu1 %v2031_v41 }
  0x86   :  { %795 = vmatprep.subr.bf16.mxu1 %v2032_v42  ;;  %v1998_v42 = vld [vmem:[#allocation6 + $0x68] ss:$16 sps:$4 sm:$0xff]  }
  0x89   :  { %796 = vmatpush1.bf16.msra.mxu1 %v2037_v43 }
  0x8a   :  { %797 = vmatprep.subr.bf16.mxu1 %v2038_v44 }
  0x8d   :  { %798 = vmatpush1.bf16.msra.mxu1 %v2043_v45 }
  0x8e   :  { %799 = vmatprep.subr.bf16.mxu1 %v2044_v46  ;;  %v2004_v46 = vld [vmem:[#allocation6 + $0x88] ss:$16 sps:$4 sm:$0xff]  }
  0x91   :  { %800 = vmatpush1.bf16.msra.mxu1 %v2049_v47 }
  0x92   :  { %801 = vmatprep.subr.bf16.mxu1 %v2050_v48  ;;  %v2012_v48 = vld [vmem:[#allocation6 + $0xac] ss:$16 sps:$4 sm:$0xff]  }
  0x95   :  { %802 = vmatpush1.bf16.msra.mxu1 %v2055_v49  ;;  %v2010_v49 = vld [vmem:[#allocation6 + $0xa8] ss:$16 sps:$4 sm:$0xff]  }
  0x96   :  { %803 = vmatprep.subr.bf16.mxu1 %v2056_v50  ;;  %v2018_v50 = vld [vmem:[#allocation6 + $0xcc] ss:$16 sps:$4 sm:$0xff]  }
  0xdb   :  { %v149_v57 = vpop.permute.xlu1 %148 }
  0xdc   :  { %v122_v58 = vpop.permute.xlu0 %121  ;;  %v167_v63 = vmul.f32 %v166_v59, %v149_v57  ;;  %v2022_v57 = vld [vmem:[#allocation6 + $0xe8] ss:$16 sps:$4 sm:$0xff]  }
  0xdd   :  { %v143_v0 = vmul.f32 %v142_v60, %v122_v58  ;;  %v2030_v58 = vld [vmem:[#allocation6 + $0x10c] ss:$16 sps:$4 sm:$0xff]  }
  0xdf   :  { %v153_v62 = vpop.permute.xlu1 %152  ;;  %v171_v4 = vadd.f32 %v167_v63, %v143_v0  ;;  %v2040_v63 = vld [vmem:[#allocation6 + $0x148] ss:$16 sps:$4 sm:$0xff]   ;;  %v2048_v0 = vld [vmem:[#allocation6 + $0x16c] ss:$16 sps:$4 sm:$0xff]  }
  0xe0   :  { %v168_v7 = vmul.f32 %v166_v59, %v153_v62  ;;  %v2042_v62 = vld [vmem:[#allocation6 + $0x14c] ss:$16 sps:$4 sm:$0xff]  }
  0xe1   :  { %v177_v2 = vpop.permute.xlu0 %176 }
  0xe2   :  { %v195_v3 = vmul.f32 %v194_v61, %v177_v2  ;;  %v2046_v2 = vld [vmem:[#allocation6 + $0x168] ss:$16 sps:$4 sm:$0xff]  }
  0xe4   :  { %v181_v5 = vpop.permute.xlu1 %180  ;;  %v199_v8 = vadd.f32 %v195_v3, %v171_v4  ;;  %v2054_v3 = vld [vmem:[#allocation6 + $0x18c] ss:$16 sps:$4 sm:$0xff]   ;;  %v2052_v4 = vld [vmem:[#allocation6 + $0x188] ss:$16 sps:$4 sm:$0xff]  }
  0xe5   :  { %v196_v11 = vmul.f32 %v194_v61, %v181_v5  ;;  %v2060_v5 = vld [vmem:[#allocation6 + $0x1ac] ss:$16 sps:$4 sm:$0xff]  }
  0xe6   :  { %v127_v6 = vpop.permute.xlu0 %126  ;;  %v210_v15 = vadd.f32 %v1570_v10, %v199_v8  ;;  %v2062_v8 = vld [vmem:[#allocation6 + $0x1c4] ss:$16 sps:$4 sm:$0xff]  }
  0xe7   :  { %v144_v9 = vmul.f32 %v142_v60, %v127_v6  ;;  %v2058_v6 = vld [vmem:[#allocation6 + $0x1a8] ss:$16 sps:$4 sm:$0xff]  }
  0xe8   :  { %v214_v18 = vmax.f32 %v210_v15, 0.0  ;;  %v2073_v15 = vld [vmem:[#allocation6 + $0x1e0] ss:$16 sps:$4 sm:$0xff]  }
  0xe9   :  { %v172_v12 = vadd.f32 %v168_v7, %v144_v9  ;;  %v132_v13 = vpop.permute.xlu1 %131  ;;  %v2061_v7 = vld [vmem:[#allocation6 + $0x1a0] ss:$16 sps:$4 sm:$0xff]   ;;  %v2066_v9 = vld [vmem:[#allocation6 + $0x1cc] ss:$16 sps:$4 sm:$0xff]  }
  0xea   :  { %v137_v14 = vpop.permute.xlu0 %136  ;;  %v145_v24 = vmul.f32 %v142_v60, %v132_v13  ;;  %804 = vmatpush1.bf16.msra.mxu1 %v2061_v7  ;;  %v2072_v13 = vld [vmem:[#allocation6 + $0x1ec] ss:$16 sps:$4 sm:$0xff]  }
  0xeb   :  { %v200_v16 = vadd.f32 %v196_v11, %v172_v12  ;;  %v146_v33 = vmul.f32 %v142_v60, %v137_v14  ;;  %v2036_v60 = vld [vmem:[#allocation6 + $0x12c] ss:$16 sps:$4 sm:$0xff]   ;;  %v2067_v11 = vld [vmem:[#allocation6 + $0x1c0] ss:$16 sps:$4 sm:$0xff]   ;;  %805 = vmatprep.subr.bf16.mxu1 %v2062_v8  ;;  %v2068_v12 = vld [vmem:[#allocation6 + $0x1e4] ss:$16 sps:$4 sm:$0xff]  }
  0xec   :  { %v2070_v14 = vld [vmem:[#allocation6 + $0x1e8] ss:$16 sps:$4 sm:$0xff]   ;;  %v1056_v8 = vld [vmem:[#allocation8 + $0x60] sm:$0xff] }
  0xed   :  { %v211_v17 = vadd.f32 %v1570_v10, %v200_v16  ;;  %v1045_v16 = vld [vmem:[#allocation8 + $0x8] sm:$0xff] }
  0xee   :  { %v157_v19 = vpop.permute.xlu1 %156  ;;  %806 = vmatpush1.bf16.msra.mxu1 %v2067_v11  ;;  %v1061_v11 = vld [vmem:[#allocation8 + $0x88] sm:$0xff] }
  0xef   :  { %v215_v20 = vmax.f32 %v211_v17, 0.0  ;;  %v169_v21 = vmul.f32 %v166_v59, %v157_v19  ;;  %v185_v22 = vpop.permute.xlu0 %184  ;;  %807 = vmatprep.subr.bf16.mxu1 %v2068_v12  ;;  %v1047_v17 = vld [vmem:[#allocation8 + $0x18] sm:$0xff]  ;;  %v236_v19 = vld [vmem:[%s2468_s4] sm:$0x3] }
  0xf0   :  { %v197_v28 = vmul.f32 %v194_v61, %v185_v22  ;;  %v1063_v12 = vld [vmem:[#allocation8 + $0x98] sm:$0xff] }
  0xf1   :  { %v218_v25 = vpack.c.bf16 %v215_v20, %v214_v18  ;;  %v173_v27 = vadd.f32 %v169_v21, %v145_v24  ;;  %v1740_v18 = vpack.c.bf16 %v1047_v17, %v1045_v16  ;;  %v241_v20 = vrot.slane %v236_v19, %v2398_v54  ;;  %v1065_v17 = vld [vmem:[#allocation8 + $0xa8] sm:$0xff] }
  0xf2   :  { %v161_v29 = vpop.permute.xlu1 %160  ;;  %808 = vmatpush1.bf16.msra.mxu1 %v2073_v15  ;;  %v245_v21 = vrot.slane %v236_v19, %v2395_v53  ;;  %v1062_v15 = vld [vmem:[#allocation8 + $0x90] sm:$0xff] }
  0xf3   :  { %361 = vmatmul.mubr.bf16.vlgmr.msra.gmra.mrb[0].mxu0 %v218_v25  ;;  %v170_v31 = vmul.f32 %v166_v59, %v161_v29  ;;  %v201_v34 = vadd.f32 %v197_v28, %v173_v27  ;;  %v2028_v59 = vld [vmem:[#allocation6 + $0x108] ss:$16 sps:$4 sm:$0xff]   ;;  %1741 = vmatprep.subr.bf16.mxu1 %v1740_v18 }
  0xf4   :  { %370 = vmatprep.mubr.bf16.mxu0 %v2224_v1  ;;  %831 = vmatpush1.bf16.msra.mxu0 %v1980_v23  ;;  %v2006_v1 = vld [vmem:[#allocation6 + $0x8c] ss:$16 sps:$4 sm:$0xff]  }
  0xf5   :  { %832 = vmatprep.subr.bf16.mxu0 %v1988_v26  ;;  %v174_v37 = vadd.f32 %v170_v31, %v146_v33  ;;  %v212_v40 = vadd.f32 %v1570_v10, %v201_v34  ;;  %v1046_v33 = vld [vmem:[#allocation8 + $0x10] sm:$0xff]  ;;  %v1067_v18 = vld [vmem:[#allocation8 + $0xb8] sm:$0xff] }
  0xf6   :  { %v1760_v19 = vpack.c.bf16 %v1067_v18, %v1065_v17  ;;  %v1107_v17 = vld [vmem:[#allocation8 + $0x1f8] sm:$0xff] }
  0xf7   :  { %v189_v35 = vpop.permute.xlu1 %188  ;;  %v216_v44 = vmax.f32 %v212_v40, 0.0 }
  0xf8   :  { %833 = vmatpush1.bf16.msra.mxu0 %v1986_v30  ;;  %v198_v38 = vmul.f32 %v194_v61, %v189_v35  ;;  %v2034_v61 = vld [vmem:[#allocation6 + $0x128] ss:$16 sps:$4 sm:$0xff]  }
  0xf9   :  { %834 = vmatprep.subr.bf16.mxu0 %v1994_v32  ;;  %v1044_v32 = vld [vmem:[#allocation8] sm:$0xff] }
  0xfa   :  { %v202_v41 = vadd.f32 %v198_v38, %v174_v37  ;;  %v1051_v37 = vld [vmem:[#allocation8 + $0x38] sm:$0xff]  ;;  %v1742_v40 = vpack.c.bf16 %v1046_v33, %v1044_v32  ;;  %v1072_v32 = vld [vmem:[#allocation8 + $0xe0] sm:$0xff]  ;;  %v1074_v33 = vld [vmem:[#allocation8 + $0xf0] sm:$0xff] }
  0xfc   :  { %835 = vmatpush1.bf16.msra.mxu0 %v1992_v36  ;;  %v213_v43 = vadd.f32 %v1570_v10, %v202_v41  ;;  %v2064_v10 = vld [vmem:[#allocation6 + $0x1c8] ss:$16 sps:$4 sm:$0xff]  }
  0xfd   :  { %836 = vmatprep.subr.bf16.mxu0 %v2000_v39  ;;  %v1049_v36 = vld [vmem:[#allocation8 + $0x28] sm:$0xff] }
  0xfe   :  { %v217_v45 = vmax.f32 %v213_v43, 0.0  ;;  %v1744_v41 = vpack.c.bf16 %v1051_v37, %v1049_v36  ;;  %v1050_v43 = vld [vmem:[#allocation8 + $0x30] sm:$0xff]  ;;  %v1079_v36 = vld [vmem:[#allocation8 + $0x118] sm:$0xff] }
 0x100   :  { %837 = vmatpush1.bf16.msra.mxu0 %v1998_v42  ;;  %v219_v47 = vpack.c.bf16 %v217_v45, %v216_v44  ;;  %v1048_v42 = vld [vmem:[#allocation8 + $0x20] sm:$0xff]  ;;  %v1055_v44 = vld [vmem:[#allocation8 + $0x58] sm:$0xff] }
 0x101   :  { %838 = vmatprep.subr.bf16.mxu0 %v2006_v1  ;;  %v1053_v1 = vld [vmem:[#allocation8 + $0x48] sm:$0xff]  ;;  %v1746_v45 = vpack.c.bf16 %v1050_v43, %v1048_v42  ;;  %v1083_v42 = vld [vmem:[#allocation8 + $0x138] sm:$0xff] }
 0x102   :  { %371 = vmatmul.mubr.bf16.gmra.mrb[4].mxu0 %v219_v47  ;;  %v1052_v47 = vld [vmem:[#allocation8 + $0x40] sm:$0xff] }
 0x104   :  { %839 = vmatpush1.bf16.msra.mxu0 %v2004_v46  ;;  %v1748_v46 = vpack.c.bf16 %v1055_v44, %v1053_v1  ;;  %v1080_v1 = vld [vmem:[#allocation8 + $0x120] sm:$0xff]  ;;  %v1082_v44 = vld [vmem:[#allocation8 + $0x130] sm:$0xff] }
 0x105   :  { %840 = vmatprep.subr.bf16.mxu0 %v2012_v48  ;;  %v1054_v48 = vld [vmem:[#allocation8 + $0x50] sm:$0xff] }
 0x108   :  { %841 = vmatpush1.bf16.msra.mxu0 %v2010_v49 }
 0x109   :  { %842 = vmatprep.subr.bf16.mxu0 %v2018_v50  ;;  %v1750_v50 = vpack.c.bf16 %v1054_v48, %v1052_v47  ;;  %v1087_v47 = vld [vmem:[#allocation8 + $0x158] sm:$0xff] }
 0x10c   :  { %843 = vmatpush1.bf16.msra.mxu0 %v2016_v51 }
 0x10d   :  { %844 = vmatprep.subr.bf16.mxu0 %v2024_v55 }
 0x110   :  { %845 = vmatpush1.bf16.msra.mxu0 %v2022_v57 }
 0x111   :  { %846 = vmatprep.subr.bf16.mxu0 %v2030_v58 }
 0x114   :  { %847 = vmatpush1.bf16.msra.mxu0 %v2028_v59 }
 0x115   :  { %848 = vmatprep.subr.bf16.mxu0 %v2036_v60 }
 0x118   :  { %849 = vmatpush1.bf16.msra.mxu0 %v2034_v61 }
 0x119   :  { %850 = vmatprep.subr.bf16.mxu0 %v2042_v62 }
 0x11c   :  { %851 = vmatpush1.bf16.msra.mxu0 %v2040_v63 }
 0x11d   :  { %852 = vmatprep.subr.bf16.mxu0 %v2048_v0 }
 0x120   :  { %853 = vmatpush1.bf16.msra.mxu0 %v2046_v2 }
 0x121   :  { %854 = vmatprep.subr.bf16.mxu0 %v2054_v3 }
 0x124   :  { %855 = vmatpush1.bf16.msra.mxu0 %v2052_v4 }
 0x125   :  { %856 = vmatprep.subr.bf16.mxu0 %v2060_v5  ;;  %v1057_v5 = vld [vmem:[#allocation8 + $0x68] sm:$0xff] }
 0x128   :  { %857 = vmatpush1.bf16.msra.mxu0 %v2058_v6  ;;  %v1059_v6 = vld [vmem:[#allocation8 + $0x78] sm:$0xff] }
 0x129   :  { %858 = vmatprep.subr.bf16.mxu0 %v2066_v9  ;;  %v1752_v7 = vpack.c.bf16 %v1059_v6, %v1057_v5  ;;  %v1058_v9 = vld [vmem:[#allocation8 + $0x70] sm:$0xff]  ;;  %v1097_v5 = vld [vmem:[#allocation8 + $0x1a8] sm:$0xff]  ;;  %v1099_v6 = vld [vmem:[#allocation8 + $0x1b8] sm:$0xff] }
 0x12c   :  { %859 = vmatpush1.bf16.msra.mxu0 %v2064_v10  ;;  %v1754_v10 = vpack.c.bf16 %v1058_v9, %v1056_v8  ;;  %v1096_v8 = vld [vmem:[#allocation8 + $0x1a0] sm:$0xff]  ;;  %v1098_v9 = vld [vmem:[#allocation8 + $0x1b0] sm:$0xff] }
 0x12d   :  { %860 = vmatprep.subr.bf16.mxu0 %v2072_v13  ;;  %v1756_v13 = vpack.c.bf16 %v1063_v12, %v1061_v11  ;;  %v1101_v11 = vld [vmem:[#allocation8 + $0x1c8] sm:$0xff]  ;;  %v1103_v12 = vld [vmem:[#allocation8 + $0x1d8] sm:$0xff] }
 0x130   :  { %861 = vmatpush1.bf16.msra.mxu0 %v2070_v14  ;;  %v1060_v14 = vld [vmem:[#allocation8 + $0x80] sm:$0xff] }
 0x131   :  { %v1758_v16 = vpack.c.bf16 %v1062_v15, %v1060_v14  ;;  %v1796_v14 = vpack.c.bf16 %v1103_v12, %v1101_v11  ;;  %v1102_v15 = vld [vmem:[#allocation8 + $0x1d0] sm:$0xff] }
 0x1c6   :  { %v362_v22 = vpop.f32.mrb[0].mxu0 }
 0x1c7   :  { %v363_v23 = vadd.f32 %v362_v22, %v241_v20  ;;  %v364_v24 = vpop.f32.mrb[1].mxu0 }
 0x1c8   :  { %v365_v25 = vadd.f32 %v364_v24, %v245_v21  ;;  %v366_v26 = vpop.f32.mrb[2].mxu0  ;;  %v1071_v24 = vld [vmem:[#allocation8 + $0xd8] sm:$0xff] }
 0x1c9   :  { %v367_v27 = vadd.f32 %v366_v26, %v241_v20  ;;  %v368_v28 = vpop.f32.mrb[3].mxu0  ;;  %v381_v30 = vmax.f32 %v363_v23, 0.0  ;;  %v1069_v23 = vld [vmem:[#allocation8 + $0xc8] sm:$0xff]  ;;  %v1068_v26 = vld [vmem:[#allocation8 + $0xc0] sm:$0xff] }
 0x1ca   :  { %v369_v29 = vadd.f32 %v368_v28, %v245_v21  ;;  %v382_v34 = vmax.f32 %v365_v25, 0.0  ;;  %v1764_v25 = vpack.c.bf16 %v1071_v24, %v1069_v23  ;;  %v1109_v23 = vld [vmem:[#allocation8 + $0x208] sm:$0xff]  ;;  %v1111_v24 = vld [vmem:[#allocation8 + $0x218] sm:$0xff] }
 0x1cb   :  { %v383_v31 = vmax.f32 %v367_v27, 0.0  ;;  %v1070_v27 = vld [vmem:[#allocation8 + $0xd0] sm:$0xff] }
 0x1cc   :  { %v384_v35 = vmax.f32 %v369_v29, 0.0  ;;  %v1766_v28 = vpack.c.bf16 %v1070_v27, %v1068_v26  ;;  %v1073_v29 = vld [vmem:[#allocation8 + $0xe8] sm:$0xff]  ;;  %v1366_v26 = vld [vmem:[#allocation9 + $0x80] sm:$0xff] }
 0x1cd   :  { %v389_v38 = vpack.c.bf16 %v383_v31, %v381_v30  ;;  %v1075_v30 = vld [vmem:[#allocation8 + $0xf8] sm:$0xff]  ;;  %v1367_v27 = vld [vmem:[#allocation9 + $0x88] sm:$0xff] }
 0x1ce   :  { %v390_v39 = vpack.c.bf16 %v384_v35, %v382_v34  ;;  %v1768_v31 = vpack.c.bf16 %v1075_v30, %v1073_v29  ;;  %v1770_v34 = vpack.c.bf16 %v1074_v33, %v1072_v32  ;;  %v1077_v35 = vld [vmem:[#allocation8 + $0x108] sm:$0xff]  ;;  %v1868_v29 = vpack.c.bf16 %v1367_v27, %v1366_v26  ;;  %v1369_v32 = vld [vmem:[#allocation9 + $0x98] sm:$0xff] }
 0x1cf   :  { %v1772_v37 = vpack.c.bf16 %v1079_v36, %v1077_v35  ;;  %v1351_v30 = vld [vmem:[#allocation9 + $0x8] sm:$0xff]  ;;  %v1352_v35 = vld [vmem:[#allocation9 + $0x10] sm:$0xff]  ;;  %v1353_v36 = vld [vmem:[#allocation9 + $0x18] sm:$0xff] }
 0x1d0   :  { %809 = vmatprep.mubr.bf16.mxu1 %v390_v39  ;;  %862 = vmatprep.mubr.bf16.mxu0 %v390_v39  ;;  %v1078_v39 = vld [vmem:[#allocation8 + $0x110] sm:$0xff] }
 0x1d1   :  { %810 = vmatmul.mubr.bf16.vlgmr.msra.gmra.mrb[0].mxu1 %v389_v38  ;;  %863 = vmatmul.mubr.bf16.vlgmr.msra.gmra.mrb[8].mxu0 %v389_v38  ;;  %v1076_v38 = vld [vmem:[#allocation8 + $0x100] sm:$0xff] }
 0x1d2   :  { %1743 = vmatpush1.bf16.msra.mxu1 %v1742_v40  ;;  %v1774_v40 = vpack.c.bf16 %v1078_v39, %v1076_v38  ;;  %1869 = vmatprep.subr.bf16.mxu0 %v1868_v29  ;;  %v1371_v38 = vld [vmem:[#allocation9 + $0xa8] sm:$0xff]  ;;  %v1874_v39 = vpack.c.bf16 %v1353_v36, %v1352_v35 }
 0x1d3   :  { %1745 = vmatprep.subr.bf16.mxu1 %v1744_v41  ;;  %v1081_v41 = vld [vmem:[#allocation8 + $0x128] sm:$0xff] }
 0x1d4   :  { %v1776_v43 = vpack.c.bf16 %v1083_v42, %v1081_v41  ;;  %v1354_v41 = vld [vmem:[#allocation9 + $0x20] sm:$0xff]  ;;  %v1355_v42 = vld [vmem:[#allocation9 + $0x28] sm:$0xff] }
 0x1d5   :  { %v372_v49 = vpop.f32.mrb[4].mxu0 }
 0x1d6   :  { %1747 = vmatpush1.bf16.msra.mxu1 %v1746_v45  ;;  %v373_v51 = vadd.f32 %v372_v49, %v241_v20  ;;  %v374_v55 = vpop.f32.mrb[5].mxu0  ;;  %v1778_v45 = vpack.c.bf16 %v1082_v44, %v1080_v1  ;;  %v1084_v49 = vld [vmem:[#allocation8 + $0x140] sm:$0xff]  ;;  %v1373_v1 = vld [vmem:[#allocation9 + $0xb8] sm:$0xff]  ;;  %v1878_v44 = vpack.c.bf16 %v1355_v42, %v1354_v41 }
 0x1d7   :  { %1749 = vmatprep.subr.bf16.mxu1 %v1748_v46  ;;  %v375_v57 = vadd.f32 %v374_v55, %v245_v21  ;;  %v376_v58 = vpop.f32.mrb[6].mxu0  ;;  %v1085_v46 = vld [vmem:[#allocation8 + $0x148] sm:$0xff] }
 0x1d8   :  { %v377_v59 = vadd.f32 %v376_v58, %v241_v20  ;;  %v378_v60 = vpop.f32.mrb[7].mxu0  ;;  %v385_v62 = vmax.f32 %v373_v51, 0.0  ;;  %v1064_v20 = vld [vmem:[#allocation8 + $0xa0] sm:$0xff]  ;;  %v1780_v48 = vpack.c.bf16 %v1087_v47, %v1085_v46  ;;  %v1089_v55 = vld [vmem:[#allocation8 + $0x168] sm:$0xff]  ;;  %v1356_v46 = vld [vmem:[#allocation9 + $0x30] sm:$0xff] }
 0x1d9   :  { %v379_v61 = vadd.f32 %v378_v60, %v245_v21  ;;  %v386_v0 = vmax.f32 %v375_v57, 0.0  ;;  %v1066_v21 = vld [vmem:[#allocation8 + $0xb0] sm:$0xff]  ;;  %v1091_v57 = vld [vmem:[#allocation8 + $0x178] sm:$0xff] }
 0x1da   :  { %1751 = vmatpush1.bf16.msra.mxu1 %v1750_v50  ;;  %v387_v63 = vmax.f32 %v377_v59, 0.0  ;;  %v1762_v22 = vpack.c.bf16 %v1066_v21, %v1064_v20  ;;  %v1086_v50 = vld [vmem:[#allocation8 + $0x150] sm:$0xff]  ;;  %v1784_v58 = vpack.c.bf16 %v1091_v57, %v1089_v55  ;;  %v1088_v59 = vld [vmem:[#allocation8 + $0x160] sm:$0xff]  ;;  %v1357_v47 = vld [vmem:[#allocation9 + $0x38] sm:$0xff] }
 0x1db   :  { %v388_v2 = vmax.f32 %v379_v61, 0.0  ;;  %1753 = vmatprep.subr.bf16.mxu1 %v1752_v7  ;;  %v1782_v51 = vpack.c.bf16 %v1086_v50, %v1084_v49  ;;  %v1090_v60 = vld [vmem:[#allocation8 + $0x170] sm:$0xff]  ;;  %v1792_v7 = vpack.c.bf16 %v1099_v6, %v1097_v5  ;;  %v1104_v20 = vld [vmem:[#allocation8 + $0x1e0] sm:$0xff]  ;;  %v1375_v49 = vld [vmem:[#allocation9 + $0xc8] sm:$0xff] }
 0x1dc   :  { %v391_v3 = vpack.c.bf16 %v387_v63, %v385_v62  ;;  %v1786_v61 = vpack.c.bf16 %v1090_v60, %v1088_v59  ;;  %v1093_v62 = vld [vmem:[#allocation8 + $0x188] sm:$0xff]  ;;  %v1095_v63 = vld [vmem:[#allocation8 + $0x198] sm:$0xff]  ;;  %v1106_v21 = vld [vmem:[#allocation8 + $0x1f0] sm:$0xff] }
 0x1dd   :  { %v392_v4 = vpack.c.bf16 %v388_v2, %v386_v0  ;;  %v1788_v0 = vpack.c.bf16 %v1095_v63, %v1093_v62  ;;  %v1092_v2 = vld [vmem:[#allocation8 + $0x180] sm:$0xff]  ;;  %v1359_v63 = vld [vmem:[#allocation9 + $0x48] sm:$0xff]  ;;  %v1376_v5 = vld [vmem:[#allocation9 + $0xd0] sm:$0xff] }
 0x1de   :  { %1755 = vmatpush1.bf16.msra.mxu1 %v1754_v10  ;;  %v1794_v10 = vpack.c.bf16 %v1098_v9, %v1096_v8  ;;  %v1358_v62 = vld [vmem:[#allocation9 + $0x40] sm:$0xff]  ;;  %v1377_v6 = vld [vmem:[#allocation9 + $0xd8] sm:$0xff] }
 0x1df   :  { %819 = vmatprep.mubr.bf16.mxu1 %v392_v4  ;;  %872 = vmatprep.mubr.bf16.mxu0 %v392_v4  ;;  %v1886_v11 = vpack.c.bf16 %v1359_v63, %v1358_v62 }
 0x1e0   :  { %820 = vmatmul.mubr.bf16.gmra.mrb[4].mxu1 %v391_v3  ;;  %873 = vmatmul.mubr.bf16.gmra.mrb[12].mxu0 %v391_v3  ;;  %v1094_v3 = vld [vmem:[#allocation8 + $0x190] sm:$0xff] }
 0x1e1   :  { %1757 = vmatprep.subr.bf16.mxu1 %v1756_v13  ;;  %v1790_v4 = vpack.c.bf16 %v1094_v3, %v1092_v2  ;;  %v1100_v13 = vld [vmem:[#allocation8 + $0x1c0] sm:$0xff] }
 0x1e2   :  { %1759 = vmatpush1.bf16.msra.mxu1 %v1758_v16  ;;  %v1105_v16 = vld [vmem:[#allocation8 + $0x1e8] sm:$0xff]  ;;  %v1798_v18 = vpack.c.bf16 %v1102_v15, %v1100_v13  ;;  %v1360_v15 = vld [vmem:[#allocation9 + $0x50] sm:$0xff] }
 0x1e3   :  { %1761 = vmatprep.subr.bf16.mxu1 %v1760_v19  ;;  %v1800_v19 = vpack.c.bf16 %v1107_v17, %v1105_v16  ;;  %v1361_v16 = vld [vmem:[#allocation9 + $0x58] sm:$0xff] }
 0x1e4   :  { %v1890_v27 = vpack.c.bf16 %v1361_v16, %v1360_v15  ;;  %v1023_v15 = vsub.s32 3, %v2392_v52 }
 0x1e6   :  { %1763 = vmatpush1.bf16.msra.mxu1 %v1762_v22  ;;  %v1802_v22 = vpack.c.bf16 %v1106_v21, %v1104_v20  ;;  %v1379_v20 = vld [vmem:[#allocation9 + $0xe8] sm:$0xff]  ;;  %v2226_v21 = vmov 1983009808  }
 0x1e7   :  { %1765 = vmatprep.subr.bf16.mxu1 %v1764_v25  ;;  %v1804_v25 = vpack.c.bf16 %v1111_v24, %v1109_v23 }
 0x1ea   :  { %1767 = vmatpush1.bf16.msra.mxu1 %v1766_v28  ;;  %v1350_v28 = vld [vmem:[#allocation9] sm:$0xff] }
 0x1eb   :  { %1769 = vmatprep.subr.bf16.mxu1 %v1768_v31  ;;  %v1368_v31 = vld [vmem:[#allocation9 + $0x90] sm:$0xff]  ;;  %v1870_v33 = vpack.c.bf16 %v1351_v30, %v1350_v28 }
 0x1ed   :  { %1871 = vmatpush3.bf16.msra.mxu0 %v1870_v33 }
 0x1ee   :  { %1771 = vmatpush1.bf16.msra.mxu1 %v1770_v34  ;;  %v1872_v34 = vpack.c.bf16 %v1369_v32, %v1368_v31 }
 0x1ef   :  { %1773 = vmatprep.subr.bf16.mxu1 %v1772_v37  ;;  %v1370_v37 = vld [vmem:[#allocation9 + $0xa0] sm:$0xff] }
 0x1f0   :  { %1873 = vmatprep.subr.bf16.mxu0 %v1872_v34 }
 0x1f1   :  { %1875 = vmatpush3.bf16.msra.mxu0 %v1874_v39 }
 0x1f2   :  { %1775 = vmatpush1.bf16.msra.mxu1 %v1774_v40  ;;  %v1876_v40 = vpack.c.bf16 %v1371_v38, %v1370_v37 }
 0x1f3   :  { %1777 = vmatprep.subr.bf16.mxu1 %v1776_v43  ;;  %v1372_v43 = vld [vmem:[#allocation9 + $0xb0] sm:$0xff] }
 0x1f4   :  { %1877 = vmatprep.subr.bf16.mxu0 %v1876_v40 }
 0x1f5   :  { %1879 = vmatpush3.bf16.msra.mxu0 %v1878_v44 }
 0x1f6   :  { %1779 = vmatpush1.bf16.msra.mxu1 %v1778_v45  ;;  %v1880_v45 = vpack.c.bf16 %v1373_v1, %v1372_v43 }
 0x1f7   :  { %1781 = vmatprep.subr.bf16.mxu1 %v1780_v48  ;;  %v1374_v48 = vld [vmem:[#allocation9 + $0xc0] sm:$0xff] }
 0x1f8   :  { %1881 = vmatprep.subr.bf16.mxu0 %v1880_v45 }
 0x1fa   :  { %1783 = vmatpush1.bf16.msra.mxu1 %v1782_v51 }
 0x1fb   :  { %1785 = vmatprep.subr.bf16.mxu1 %v1784_v58  ;;  %v1882_v58 = vpack.c.bf16 %v1357_v47, %v1356_v46 }
 0x1fd   :  { %1883 = vmatpush3.bf16.msra.mxu0 %v1882_v58 }
 0x1fe   :  { %1787 = vmatpush1.bf16.msra.mxu1 %v1786_v61  ;;  %v1884_v61 = vpack.c.bf16 %v1375_v49, %v1374_v48 }
 0x1ff   :  { %1789 = vmatprep.subr.bf16.mxu1 %v1788_v0 }
 0x200   :  { %1885 = vmatprep.subr.bf16.mxu0 %v1884_v61 }
 0x201   :  { %1887 = vmatpush3.bf16.msra.mxu0 %v1886_v11 }
 0x202   :  { %1791 = vmatpush1.bf16.msra.mxu1 %v1790_v4 }
 0x203   :  { %1793 = vmatprep.subr.bf16.mxu1 %v1792_v7 }
 0x206   :  { %1795 = vmatpush1.bf16.msra.mxu1 %v1794_v10 }
 0x207   :  { %1797 = vmatprep.subr.bf16.mxu1 %v1796_v14  ;;  %v1888_v14 = vpack.c.bf16 %v1377_v6, %v1376_v5 }
 0x209   :  { %1889 = vmatprep.subr.bf16.mxu0 %v1888_v14 }
 0x20a   :  { %1799 = vmatpush1.bf16.msra.mxu1 %v1798_v18  ;;  %1891 = vmatpush3.bf16.msra.mxu0 %v1890_v27 }
 0x20b   :  { %1801 = vmatprep.subr.bf16.mxu1 %v1800_v19  ;;  %v1378_v19 = vld [vmem:[#allocation9 + $0xe0] sm:$0xff] }
 0x20c   :  { %v1892_v30 = vpack.c.bf16 %v1379_v20, %v1378_v19 }
 0x20e   :  { %1803 = vmatpush1.bf16.msra.mxu1 %v1802_v22  ;;  %v956_v22 = vunpack.c.l.s4 %v2226_v21  ;;  %1893 = vmatprep.subr.bf16.mxu0 %v1892_v30 }
 0x20f   :  { %1805 = vmatprep.subr.bf16.mxu1 %v1804_v25 }
 0x210   :  { %v957_v33 = vunpack.c.0.s8 %v956_v22 }
 0x212   :  { %v2418_v42 = vsub.s32 %v957_v33, %v2392_v52 }
 0x2a4   :  { %v811_v50 = vpop.f32.mrb[0].mxu1  ;;  %v864_v51 = vpop.f32.mrb[8].mxu0 }
 0x2a5   :  { %v813_v55 = vpop.f32.mrb[1].mxu1  ;;  %v866_v57 = vpop.f32.mrb[9].mxu0 }
 0x2a6   :  { %v815_v59 = vpop.f32.mrb[2].mxu1  ;;  %v868_v60 = vpop.f32.mrb[10].mxu0 }
 0x2a7   :  { %v883_v0 = vmax.f32 %v811_v50, %v815_v59  ;;  %v897_v2 = vmax.f32 %v864_v51, %v868_v60  ;;  %v817_v3 = vpop.f32.mrb[3].mxu1  ;;  %v870_v4 = vpop.f32.mrb[11].mxu0 }
 0x2a8   :  { %v890_v7 = vmax.f32 %v813_v55, %v817_v3  ;;  %v904_v8 = vmax.f32 %v866_v57, %v870_v4 }
 0x2a9   :  { %v884_v9 = vrot.slane %v883_v0, 4  ;;  %v898_v10 = vrot.slane %v897_v2, 4 }
 0x2aa   :  { %v891_v12 = vrot.slane %v890_v7, 4  ;;  %v905_v13 = vrot.slane %v904_v8, 4 }
 0x2ab   :  { %v885_v17 = vmax.f32 %v883_v0, %v884_v9  ;;  %v899_v18 = vmax.f32 %v897_v2, %v898_v10 }
 0x2ac   :  { %v892_v23 = vmax.f32 %v890_v7, %v891_v12  ;;  %v906_v24 = vmax.f32 %v904_v8, %v905_v13  ;;  %v1007_v12 = vld [vmem:[%s2470_s6] sm:$0xf] }
 0x2ad   :  { %v886_v25 = vrot.slane %v885_v17, 2  ;;  %v900_v26 = vrot.slane %v899_v18, 2  ;;  %v1020_v20 = vrot.slane %v1007_v12, %v193_v56  ;;  %v1024_v27 = vrot.slane %v1007_v12, %v1023_v15  ;;  %v1124_v15 = vld [vmem:[#allocation8 + $0x280] sm:$0xff] }
 0x2ae   :  { %v893_v28 = vrot.slane %v892_v23, 2  ;;  %v907_v29 = vrot.slane %v906_v24, 2 }
 0x2af   :  { %v887_v31 = vmax.f32 %v885_v17, %v886_v25  ;;  %v901_v32 = vmax.f32 %v899_v18, %v900_v26  ;;  %v1016_v26 = vrot.slane %v1007_v12, %v2395_v53 }
 0x2b0   :  { %v894_v34 = vmax.f32 %v892_v23, %v893_v28  ;;  %v908_v35 = vmax.f32 %v906_v24, %v907_v29  ;;  %v1012_v23 = vrot.slane %v1007_v12, %v2398_v54  ;;  %v1127_v12 = vld [vmem:[#allocation8 + $0x298] sm:$0xff] }
 0x2b1   :  { %v888_v36 = vrot.slane %v887_v31, 1  ;;  %v902_v37 = vrot.slane %v901_v32, 1 }
 0x2b2   :  { %v895_v38 = vrot.slane %v894_v34, 1  ;;  %v909_v39 = vrot.slane %v908_v35, 1 }
 0x2b3   :  { %v889_v40 = vmax.f32 %v887_v31, %v888_v36  ;;  %v903_v41 = vmax.f32 %v901_v32, %v902_v37  ;;  %v821_v44 = vpop.f32.mrb[4].mxu1  ;;  %v874_v45 = vpop.f32.mrb[12].mxu0 }
 0x2b4   :  { %v896_v43 = vmax.f32 %v894_v34, %v895_v38  ;;  %v910_v1 = vmax.f32 %v908_v35, %v909_v39  ;;  %v823_v46 = vpop.f32.mrb[5].mxu1  ;;  %v876_v47 = vpop.f32.mrb[13].mxu0  ;;  %v1025_v34 = vcombine.low %v1012_v23, %v1016_v26  ;;  %v1026_v35 = vcombine.low %v1020_v20, %v1024_v27  ;;  %v1133_v23 = vld [vmem:[#allocation8 + $0x2c8] sm:$0xff]  ;;  %v1132_v27 = vld [vmem:[#allocation8 + $0x2c0] sm:$0xff] }
 0x2b5   :  { %v825_v50 = vpop.f32.mrb[6].mxu1  ;;  %v878_v51 = vpop.f32.mrb[14].mxu0 }
 0x2b6   :  { %v953_v48 = vcombine.low %v889_v40, %v896_v43  ;;  %v954_v49 = vcombine.low %v903_v41, %v910_v1  ;;  %v911_v55 = vmax.f32 %v821_v44, %v825_v50  ;;  %v925_v57 = vmax.f32 %v874_v45, %v878_v51  ;;  %v827_v58 = vpop.f32.mrb[7].mxu1  ;;  %v880_v59 = vpop.f32.mrb[15].mxu0  ;;  %v1113_v50 = vld [vmem:[#allocation8 + $0x228] sm:$0xff]  ;;  %v1115_v51 = vld [vmem:[#allocation8 + $0x238] sm:$0xff] }
 0x2b7   :  { %v918_v62 = vmax.f32 %v823_v46, %v827_v58  ;;  %v932_v63 = vmax.f32 %v876_v47, %v880_v59  ;;  %v1033_v37 = vrot.slane %v1025_v34, %v2418_v42  ;;  %v1040_v38 = vrot.slane %v1026_v35, %v2418_v42  ;;  %v1108_v46 = vld [vmem:[#allocation8 + $0x200] sm:$0xff]  ;;  %v1110_v47 = vld [vmem:[#allocation8 + $0x210] sm:$0xff]  ;;  %v1141_v35 = vld [vmem:[#allocation8 + $0x308] sm:$0xff] }
 0x2b8   :  { %v961_v60 = vrot.slane %v953_v48, %v2418_v42  ;;  %v968_v61 = vrot.slane %v954_v49, %v2418_v42  ;;  %v912_v0 = vrot.slane %v911_v55, 4  ;;  %v926_v2 = vrot.slane %v925_v57, 4  ;;  %v1138_v34 = vld [vmem:[#allocation8 + $0x2f0] sm:$0xff] }
 0x2b9   :  { %v919_v4 = vrot.slane %v918_v62, 4  ;;  %v933_v5 = vrot.slane %v932_v63, 4  ;;  %v1041_v41 = vcombine.low %v1033_v37, %v1040_v38  ;;  %v1808_v59 = vpack.c.bf16 %v1115_v51, %v1113_v50  ;;  %v1140_v37 = vld [vmem:[#allocation8 + $0x300] sm:$0xff]  ;;  %v1142_v38 = vld [vmem:[#allocation8 + $0x310] sm:$0xff]  ;;  %v1153_v51 = vld [vmem:[#allocation8 + $0x368] sm:$0xff] }
 0x2ba   :  { %v969_v3 = vcombine.low %v961_v60, %v968_v61  ;;  %v913_v6 = vmax.f32 %v911_v55, %v912_v0  ;;  %v927_v7 = vmax.f32 %v925_v57, %v926_v2  ;;  %v1806_v57 = vpack.c.bf16 %v1110_v47, %v1108_v46  ;;  %v1112_v60 = vld [vmem:[#allocation8 + $0x220] sm:$0xff]  ;;  %v1114_v61 = vld [vmem:[#allocation8 + $0x230] sm:$0xff]  ;;  %v1119_v0 = vld [vmem:[#allocation8 + $0x258] sm:$0xff] }
 0x2bb   :  { %v920_v8 = vmax.f32 %v918_v62, %v919_v4  ;;  %v934_v9 = vmax.f32 %v932_v63, %v933_v5  ;;  %v1117_v63 = vld [vmem:[#allocation8 + $0x248] sm:$0xff]  ;;  %v1810_v2 = vpack.c.bf16 %v1114_v61, %v1112_v60  ;;  %v1116_v4 = vld [vmem:[#allocation8 + $0x240] sm:$0xff]  ;;  %v1118_v5 = vld [vmem:[#allocation8 + $0x250] sm:$0xff] }
 0x2bc   :  { %v914_v10 = vrot.slane %v913_v6, 2  ;;  %v928_v11 = vrot.slane %v927_v7, 2  ;;  %v1151_v46 = vld [vmem:[#allocation8 + $0x358] sm:$0xff]  ;;  %v1150_v50 = vld [vmem:[#allocation8 + $0x350] sm:$0xff]  ;;  %v1152_v60 = vld [vmem:[#allocation8 + $0x360] sm:$0xff] }
 0x2bd   :  { %v921_v13 = vrot.slane %v920_v8, 2  ;;  %v935_v14 = vrot.slane %v934_v9, 2  ;;  %v1154_v61 = vld [vmem:[#allocation8 + $0x370] sm:$0xff] }
 0x2be   :  { %v915_v16 = vmax.f32 %v913_v6, %v914_v10  ;;  %v929_v17 = vmax.f32 %v927_v7, %v928_v11  ;;  %v1121_v6 = vld [vmem:[#allocation8 + $0x268] sm:$0xff]  ;;  %v1814_v7 = vpack.c.bf16 %v1118_v5, %v1116_v4  ;;  %v1122_v10 = vld [vmem:[#allocation8 + $0x270] sm:$0xff] }
 0x2bf   :  { %v922_v18 = vmax.f32 %v920_v8, %v921_v13  ;;  %v936_v19 = vmax.f32 %v934_v9, %v935_v14  ;;  %v1120_v9 = vld [vmem:[#allocation8 + $0x260] sm:$0xff]  ;;  %v1125_v11 = vld [vmem:[#allocation8 + $0x288] sm:$0xff]  ;;  %v1158_v4 = vld [vmem:[#allocation8 + $0x390] sm:$0xff] }
 0x2c0   :  { %v916_v21 = vrot.slane %v915_v16, 1  ;;  %v930_v22 = vrot.slane %v929_v17, 1  ;;  %v1818_v13 = vpack.c.bf16 %v1122_v10, %v1120_v9  ;;  %v1820_v14 = vpack.c.bf16 %v1127_v12, %v1125_v11  ;;  %v1161_v5 = vld [vmem:[#allocation8 + $0x3a8] sm:$0xff]  ;;  %v1162_v9 = vld [vmem:[#allocation8 + $0x3b0] sm:$0xff]  ;;  %v1167_v11 = vld [vmem:[#allocation8 + $0x3d8] sm:$0xff] }
 0x2c1   :  { %v923_v24 = vrot.slane %v922_v18, 1  ;;  %v937_v25 = vrot.slane %v936_v19, 1  ;;  %v1165_v10 = vld [vmem:[#allocation8 + $0x3c8] sm:$0xff] }
 0x2c2   :  { %v917_v28 = vmax.f32 %v915_v16, %v916_v21  ;;  %v931_v29 = vmax.f32 %v929_v17, %v930_v22  ;;  %v1126_v16 = vld [vmem:[#allocation8 + $0x290] sm:$0xff]  ;;  %v1129_v17 = vld [vmem:[#allocation8 + $0x2a8] sm:$0xff]  ;;  %v1128_v21 = vld [vmem:[#allocation8 + $0x2a0] sm:$0xff] }
 0x2c3   :  { %v924_v30 = vmax.f32 %v922_v18, %v923_v24  ;;  %v938_v31 = vmax.f32 %v936_v19, %v937_v25  ;;  %v1131_v18 = vld [vmem:[#allocation8 + $0x2b8] sm:$0xff]  ;;  %v1822_v19 = vpack.c.bf16 %v1126_v16, %v1124_v15  ;;  %v1130_v22 = vld [vmem:[#allocation8 + $0x2b0] sm:$0xff]  ;;  %v1169_v16 = vld [vmem:[#allocation8 + $0x3e8] sm:$0xff] }
 0x2c4   :  { %v1824_v20 = vpack.c.bf16 %v1131_v18, %v1129_v17  ;;  %v1135_v24 = vld [vmem:[#allocation8 + $0x2d8] sm:$0xff]  ;;  %v1826_v25 = vpack.c.bf16 %v1130_v22, %v1128_v21  ;;  %v1166_v15 = vld [vmem:[#allocation8 + $0x3d0] sm:$0xff] }
 0x2c5   :  { %v970_v32 = vcombine.low %v917_v28, %v924_v30  ;;  %v971_v33 = vcombine.low %v931_v29, %v938_v31  ;;  %v1828_v26 = vpack.c.bf16 %v1135_v24, %v1133_v23  ;;  %v1134_v28 = vld [vmem:[#allocation8 + $0x2d0] sm:$0xff]  ;;  %v1137_v29 = vld [vmem:[#allocation8 + $0x2e8] sm:$0xff]  ;;  %v1139_v30 = vld [vmem:[#allocation8 + $0x2f8] sm:$0xff] }
 0x2c6   :  { %v1830_v31 = vpack.c.bf16 %v1134_v28, %v1132_v27  ;;  %v1171_v17 = vld [vmem:[#allocation8 + $0x3f8] sm:$0xff]  ;;  %v1170_v21 = vld [vmem:[#allocation8 + $0x3f0] sm:$0xff]  ;;  %v1362_v23 = vld [vmem:[#allocation9 + $0x60] sm:$0xff] }
 0x2c7   :  { %v978_v52 = vrot.slane %v970_v32, %v2418_v42  ;;  %v985_v56 = vrot.slane %v971_v33, %v2418_v42  ;;  %v1832_v32 = vpack.c.bf16 %v1139_v30, %v1137_v29  ;;  %v1136_v33 = vld [vmem:[#allocation8 + $0x2e0] sm:$0xff]  ;;  %v1363_v24 = vld [vmem:[#allocation9 + $0x68] sm:$0xff]  ;;  %v1381_v27 = vld [vmem:[#allocation9 + $0xf8] sm:$0xff] }
 0x2c8   :  { %v1364_v29 = vld [vmem:[#allocation9 + $0x70] sm:$0xff]  ;;  %v1365_v30 = vld [vmem:[#allocation9 + $0x78] sm:$0xff] }
 0x2c9   :  { %v986_v36 = vcombine.low %v978_v52, %v985_v56  ;;  %v1143_v52 = vld [vmem:[#allocation8 + $0x318] sm:$0xff]  ;;  %v1834_v56 = vpack.c.bf16 %v1138_v34, %v1136_v33  ;;  %v1172_v33 = vld [vmem:[%s2472_s8] sm:$0x3] }
 0x2ca   :  { %v1181_v34 = vrot.slane %v1172_v33, %v2395_v53 }
 0x2cb   :  { %v991_v39 = vrot.slane %v986_v36, 7  ;;  %v1836_v36 = vpack.c.bf16 %v1143_v52, %v1141_v35 }
 0x2cd   :  { %v993_v40 = vsel %vm992_vm0, %v991_v39, %v969_v3  ;;  %v1812_v3 = vpack.c.bf16 %v1119_v0, %v1117_v63  ;;  %v1159_v63 = vld [vmem:[#allocation8 + $0x398] sm:$0xff]  ;;  %v1850_v0 = vpack.c.bf16 %v1154_v61, %v1152_v60  ;;  %v1471_v60 = vld [vmem:[#allocation11 + $0x60] sm:$0xff]  ;;  %v1472_v61 = vld [vmem:[#allocation11 + $0x68] sm:$0xff] }
 0x2ce   :  { %v995_v43 = vsel %vm994_vm1, %v991_v39, %v993_v40  ;;  %v1147_v40 = vld [vmem:[#allocation8 + $0x338] sm:$0xff] }
 0x2cf   :  { %v997_v1 = vsel %vm996_vm2, %v991_v39, %v995_v43 }
 0x2d0   :  { %v999_v44 = vsel %vm998_vm3, %v991_v39, %v997_v1  ;;  %v1145_v39 = vld [vmem:[#allocation8 + $0x328] sm:$0xff]  ;;  %v1144_v1 = vld [vmem:[#allocation8 + $0x320] sm:$0xff] }
 0x2d1   :  { %v1043_v45 = vadd.f32 %v1041_v41, %v999_v44  ;;  %v1838_v41 = vpack.c.bf16 %v1142_v38, %v1140_v37  ;;  %v1840_v43 = vpack.c.bf16 %v1147_v40, %v1145_v39  ;;  %v1146_v44 = vld [vmem:[#allocation8 + $0x330] sm:$0xff]  ;;  %v1460_v37 = vld [vmem:[#allocation11 + $0x8] sm:$0xff] }
 0x2d2   :  { %v1842_v47 = vpack.c.bf16 %v1146_v44, %v1144_v1  ;;  %v1462_v1 = vld [vmem:[#allocation11 + $0x18] sm:$0xff] }
 0x2d3   :  { %v1192_v48 = vrot.slane %v1043_v45, %v2418_v42  ;;  %v1185_v49 = vcombine.high %v1043_v45, %v1043_v45  ;;  %v1149_v45 = vld [vmem:[#allocation8 + $0x348] sm:$0xff] }
 0x2d5   :  { %v1200_v55 = vcombine.high %v1192_v48, %v1192_v48  ;;  %v2436_v58 = vrot.slane %v1185_v49, %v2418_v42  ;;  %v1123_v42 = vld [vmem:[#allocation8 + $0x278] sm:$0xff]  ;;  %v1148_v49 = vld [vmem:[#allocation8 + $0x340] sm:$0xff] }
 0x2d6   :  { %v1816_v8 = vpack.c.bf16 %v1123_v42, %v1121_v6  ;;  %v1163_v6 = vld [vmem:[#allocation8 + $0x3b8] sm:$0xff] }
 0x2d7   :  { %1270 = vmatprep.mubr.f32.mxu1 %v1200_v55  ;;  %v1201_v62 = vcombine.high %v2436_v58, %v2436_v58  ;;  %v1155_v55 = vld [vmem:[#allocation8 + $0x378] sm:$0xff] }
 0x2d8   :  { %1271 = vmatmul.mubr.f32.vlgmr.msra.gmra.mrb[8].mxu1 %v1192_v48  ;;  %v1844_v48 = vpack.c.bf16 %v1151_v46, %v1149_v45  ;;  %v1463_v45 = vld [vmem:[#allocation11 + $0x20] sm:$0xff]  ;;  %v1465_v46 = vld [vmem:[#allocation11 + $0x30] sm:$0xff] }
 0x2d9   :  { %1807 = vmatpush1.bf16.msra.mxu1 %v1806_v57  ;;  %1341 = vmatprep.mubr.f32.mxu1 %v1201_v62  ;;  %v1846_v57 = vpack.c.bf16 %v1150_v50, %v1148_v49  ;;  %v1157_v62 = vld [vmem:[#allocation8 + $0x388] sm:$0xff]  ;;  %v1467_v49 = vld [vmem:[#allocation11 + $0x40] sm:$0xff] }
 0x2da   :  { %1809 = vmatprep.subr.bf16.mxu1 %v1808_v59  ;;  %v1848_v59 = vpack.c.bf16 %v1155_v55, %v1153_v51  ;;  %v1468_v50 = vld [vmem:[#allocation11 + $0x48] sm:$0xff]  ;;  %v1469_v55 = vld [vmem:[#allocation11 + $0x50] sm:$0xff] }
 0x2db   :  { %v1913_v51 = vpack.c.bf16 %v1468_v50, %v1467_v49 }
 0x2dd   :  { %1811 = vmatpush1.bf16.msra.mxu1 %v1810_v2  ;;  %v1852_v2 = vpack.c.bf16 %v1159_v63, %v1157_v62  ;;  %v1919_v62 = vpack.c.bf16 %v1472_v61, %v1471_v60  ;;  %v1473_v63 = vld [vmem:[#allocation11 + $0x70] sm:$0xff] }
 0x2de   :  { %1813 = vmatprep.subr.bf16.mxu1 %v1812_v3  ;;  %v1156_v3 = vld [vmem:[#allocation8 + $0x380] sm:$0xff] }
 0x2df   :  { %v1854_v42 = vpack.c.bf16 %v1158_v4, %v1156_v3  ;;  %v2229_v3 = vmov 0.0  }
 0x2e1   :  { %1815 = vmatpush1.bf16.msra.mxu1 %v1814_v7  ;;  %v1856_v7 = vpack.c.bf16 %v1163_v6, %v1161_v5  ;;  %v1651_v5 = vld [vmem:[%s2474_s10] ss:$0 sm:$0xff] }
 0x2e2   :  { %1817 = vmatprep.subr.bf16.mxu1 %v1816_v8  ;;  %v1160_v8 = vld [vmem:[#allocation8 + $0x3a0] sm:$0xff] }
 0x2e3   :  { %v1858_v12 = vpack.c.bf16 %v1162_v9, %v1160_v8  ;;  %v1652_v8 = vld [vmem:[%s2476_s12] ss:$0 sm:$0xff] }
 0x2e5   :  { %1819 = vmatpush1.bf16.msra.mxu1 %v1818_v13  ;;  %v1860_v13 = vpack.c.bf16 %v1167_v11, %v1165_v10 }
 0x2e6   :  { %1821 = vmatprep.subr.bf16.mxu1 %v1820_v14  ;;  %v1164_v14 = vld [vmem:[#allocation8 + $0x3c0] sm:$0xff] }
 0x2e7   :  { %v1862_v18 = vpack.c.bf16 %v1166_v15, %v1164_v14 }
 0x2e9   :  { %1823 = vmatpush1.bf16.msra.mxu1 %v1822_v19  ;;  %v1864_v19 = vpack.c.bf16 %v1171_v17, %v1169_v16 }
 0x2ea   :  { %1825 = vmatprep.subr.bf16.mxu1 %v1824_v20  ;;  %v1168_v20 = vld [vmem:[#allocation8 + $0x3e0] sm:$0xff] }
 0x2eb   :  { %v1866_v22 = vpack.c.bf16 %v1170_v21, %v1168_v20 }
 0x2ed   :  { %1827 = vmatpush1.bf16.msra.mxu1 %v1826_v25  ;;  %v1894_v25 = vpack.c.bf16 %v1363_v24, %v1362_v23 }
 0x2ee   :  { %1829 = vmatprep.subr.bf16.mxu1 %v1828_v26  ;;  %v1380_v26 = vld [vmem:[#allocation9 + $0xf0] sm:$0xff] }
 0x2ef   :  { %1895 = vmatpush3.bf16.msra.mxu0 %v1894_v25  ;;  %v1896_v28 = vpack.c.bf16 %v1381_v27, %v1380_v26 }
 0x2f1   :  { %1831 = vmatpush1.bf16.msra.mxu1 %v1830_v31  ;;  %v1898_v31 = vpack.c.bf16 %v1365_v30, %v1364_v29  ;;  %1897 = vmatprep.subr.bf16.mxu0 %v1896_v28 }
 0x2f2   :  { %1833 = vmatprep.subr.bf16.mxu1 %v1832_v32  ;;  %v2227_v32 = vmov 0.0|0.0  }
 0x2f3   :  { %1899 = vmatpush3.bf16.msra.mxu0 %v1898_v31 }
 0x2f4   :  { %1900 = vmatprep.subr.bf16.mxu0 %v2227_v32 }
 0x2f5   :  { %1835 = vmatpush1.bf16.msra.mxu1 %v1834_v56 }
 0x2f6   :  { %1837 = vmatprep.subr.bf16.mxu1 %v1836_v36  ;;  %v1459_v36 = vld [vmem:[#allocation11] sm:$0xff] }
 0x2f7   :  { %v1901_v40 = vpack.c.bf16 %v1460_v37, %v1459_v36 }
 0x2f9   :  { %1839 = vmatpush1.bf16.msra.mxu1 %v1838_v41 }
 0x2fa   :  { %1841 = vmatprep.subr.bf16.mxu1 %v1840_v43  ;;  %v1461_v43 = vld [vmem:[#allocation11 + $0x10] sm:$0xff] }
 0x2fb   :  { %v1904_v44 = vpack.c.bf16 %v1462_v1, %v1461_v43 }
 0x2fd   :  { %1843 = vmatpush1.bf16.msra.mxu1 %v1842_v47  ;;  %v1466_v47 = vld [vmem:[#allocation11 + $0x38] sm:$0xff] }
 0x2fe   :  { %1845 = vmatprep.subr.bf16.mxu1 %v1844_v48  ;;  %v1910_v48 = vpack.c.bf16 %v1466_v47, %v1465_v46 }
 0x301   :  { %1847 = vmatpush1.bf16.msra.mxu1 %v1846_v57  ;;  %v1470_v57 = vld [vmem:[#allocation11 + $0x58] sm:$0xff] }
 0x302   :  { %1849 = vmatprep.subr.bf16.mxu1 %v1848_v59  ;;  %v1916_v59 = vpack.c.bf16 %v1470_v57, %v1469_v55 }
 0x305   :  { %1851 = vmatpush1.bf16.msra.mxu1 %v1850_v0  ;;  %v1474_v0 = vld [vmem:[#allocation11 + $0x78] sm:$0xff] }
 0x306   :  { %1853 = vmatprep.subr.bf16.mxu1 %v1852_v2  ;;  %v1922_v2 = vpack.c.bf16 %v1474_v0, %v1473_v63 }
 0x309   :  { %1855 = vmatpush1.bf16.msra.mxu1 %v1854_v42 }
 0x30a   :  { %1857 = vmatprep.subr.bf16.mxu1 %v1856_v7 }
 0x30d   :  { %1859 = vmatpush1.bf16.msra.mxu1 %v1858_v12 }
 0x30e   :  { %1861 = vmatprep.subr.bf16.mxu1 %v1860_v13 }
 0x311   :  { %1863 = vmatpush1.bf16.msra.mxu1 %v1862_v18 }
 0x312   :  { %1865 = vmatprep.subr.bf16.mxu1 %v1864_v19 }
 0x315   :  { %1867 = vmatpush1.bf16.msra.mxu1 %v1866_v22 }
 0x318   :  { %1342 = vmatmul.mubr.f32.vlgmr.msra.gmra.mrb[8].mxu1 %v2436_v58  ;;  %v1177_v58 = vrot.slane %v1172_v33, %v2398_v54  ;;  %v1464_v54 = vld [vmem:[#allocation11 + $0x28] sm:$0xff] }
 0x319   :  { %v1907_v53 = vpack.c.bf16 %v1464_v54, %v1463_v45 }
 0x3eb   :  { %v1343_v35 = vpop.f32.mrb[8].mxu1 }
 0x3ec   :  { %v1924_v52 = vadd.f32 %v1343_v35, %v1177_v58  ;;  %v1345_v56 = vpop.f32.mrb[9].mxu1 }
 0x3ed   :  { %v1925_v38 = vadd.f32 %v1345_v56, %v1181_v34 }
 0x3ee   :  { %v1348_v41 = vmax.f32 %v1924_v52, 0.0 }
 0x3ef   :  { %v1349_v39 = vmax.f32 %v1925_v38, 0.0 }
 0x3f1   :  { %1453 = vmatprep.mubr.f32.mxu0 %v1349_v39 }
 0x3f2   :  { %1454 = vmatmul.mubr.f32.vlgmr.msra.gmra.mrb[16].mxu0 %v1348_v41 }
 0x3f3   :  { %1902 = vmatpush3.bf16.msra.mxu0 %v1901_v40  ;;  %1737 = vmatprep.mubr.msk.f32.mxu0 %vm2228_vm4, %v2229_v3 }
 0x3f4   :  { %1903 = vmatprep.subr.bf16.mxu0 %v2227_v32 }
 0x3f7   :  { %1905 = vmatpush3.bf16.msra.mxu0 %v1904_v44 }
 0x3f8   :  { %1906 = vmatprep.subr.bf16.mxu0 %v2227_v32 }
 0x3fb   :  { %1908 = vmatpush3.bf16.msra.mxu0 %v1907_v53 }
 0x3fc   :  { %1909 = vmatprep.subr.bf16.mxu0 %v2227_v32 }
 0x3ff   :  { %1911 = vmatpush3.bf16.msra.mxu0 %v1910_v48 }
 0x400   :  { %1912 = vmatprep.subr.bf16.mxu0 %v2227_v32 }
 0x403   :  { %1914 = vmatpush3.bf16.msra.mxu0 %v1913_v51 }
 0x404   :  { %1915 = vmatprep.subr.bf16.mxu0 %v2227_v32 }
 0x407   :  { %1917 = vmatpush3.bf16.msra.mxu0 %v1916_v59 }
 0x408   :  { %1918 = vmatprep.subr.bf16.mxu0 %v2227_v32 }
 0x40b   :  { %1920 = vmatpush3.bf16.msra.mxu0 %v1919_v62 }
 0x40c   :  { %1921 = vmatprep.subr.bf16.mxu0 %v2227_v32 }
 0x40f   :  { %1923 = vmatpush3.bf16.msra.mxu0 %v1922_v2 }
 0x4c5   :  { %v1685_v4 = vpop.f32.mrb[16].mxu0 }
 0x4c6   :  { %v1686_v6 = vpop.f32.mrb[17].mxu0 }
 0x4c7   :  { %v1687_v42 = vadd.f32 %v1686_v6, %v1685_v4 }
 0x4c9   :  { %v1456_v7 = vadd.f32 %v1687_v42, %v1651_v5 }
 0x4cb   :  { %1738 = vmatmul.mubr.f32.vlgmr.msra.gmra.mrb[18].mxu0 %v1456_v7 }
 0x59e   :  { %v1548_v9 = vpop.f32.mrb[18].mxu0 }
 0x59f   :  { %v1549_v10 = vadd.f32 %v1652_v8, %v1548_v9  ;;  %v1739_v11 = vpop.f32.mrb[19].mxu0 }
 0x5a1   :  { %1552 = vst [vmem:[#allocation12] sm:$0x3] %v1549_v10 }
 0x5a2   :  { %2195 = shalt.err (!%p2192_p2)
}
 0x5a3   :  { %s2196_s7 = scalar_lea.hbm %s2477_s13, 32 }
 0x5a4   :  { %p2197_p3 = scmp.ne.s32.totalorder %s2477_s13, %s2196_s7  ;;  %p2200_p4 = scmp.lt.u32.totalorder %s2196_s7, %s2477_s13 }
 0x5a6   :  { %p2202_p5 = pnand %p2200_p4, %p2197_p3 }
 0x5a8   :  { %2205 = shalt.err (!%p2202_p5)
}
 0x5a9   :  { %1562 = dma.vmem_to_hbm [thread:$0]  %s1560_s24, 32, %s2477_s13, [#allocation5]  }
 0x5aa   :  { %2212 = dma.done.wait [#allocation5], 32  }
 0x5ab   :  { %2213 = vsyncadd [#allocation5], 4294967264 }
 0x5ac   :  { %1566 = vsyncpa [#allocation4], 1 }
 0x5ad   :  { %1567 = vsyncpa [#allocation7], 1 }
 0x5ae   :  { %1568 = vsyncpa [#allocation10], 1 }
 0x5af   :  { %1569 = vsyncpa [#allocation5], 1 }

</bundles_post_ra>
